<compile_context>
chip_gen: v7x
topology: tpu7x:2x2x1
jax: 0.10.0
libtpu: 0.0.40
codegen_flags: <defaults>
</compile_context>

<pallas_src>
import jax
import jax.numpy as jnp
from jax.experimental import pallas as pl
from jax.experimental.pallas import tpu as pltpu


# ----------------------------- Pallas kernel ------------------------------- #

def _make_mlp_kernel(gated: bool, has_bias: bool):
    """Build the fused up-proj -> activation -> down-proj kernel body.

    Grid is (token_tile i, hidden_tile h); h is the reduction ("arbitrary") axis.
    """

    def kernel(*args):
        if gated:
            if has_bias:
                (h_ref, wg_ref, wl_ref, bg_ref, bl_ref,
                 wd_ref, bd_ref, out_ref, acc_ref) = args
            else:
                h_ref, wg_ref, wl_ref, wd_ref, out_ref, acc_ref = args
                bg_ref = bl_ref = bd_ref = None
        else:
            if has_bias:
                h_ref, wu_ref, bu_ref, wd_ref, bd_ref, out_ref, acc_ref = args
            else:
                h_ref, wu_ref, wd_ref, out_ref, acc_ref = args
                bu_ref = bd_ref = None

        hi = pl.program_id(1)

        @pl.when(hi == 0)
        def _init():
            acc_ref[...] = jnp.zeros_like(acc_ref)

        x = h_ref[...]                                             # [tm, E] bf16

        if gated:
            gate = jnp.dot(x, wg_ref[...], preferred_element_type=jnp.float32)
            lin = jnp.dot(x, wl_ref[...], preferred_element_type=jnp.float32)
            if has_bias:
                gate = gate + bg_ref[...].astype(jnp.float32)
                lin = lin + bl_ref[...].astype(jnp.float32)
            # silu(g) = g * sigmoid(g); sigmoid(g) = 0.5*(1 + tanh(g/2)):
            # one EUP push per element (vs exp + reciprocal = two).
            act = gate * (0.5 * (1.0 + jnp.tanh(0.5 * gate))) * lin
        else:
            up = jnp.dot(x, wu_ref[...], preferred_element_type=jnp.float32)
            if has_bias:
                up = up + bu_ref[...].astype(jnp.float32)
            # TODO(synk): torch.nn.GELU() defaults to the exact erf form; we use
            # the tanh approximation (max abs err ~1e-3) to stay on TPU EUP ops.
            c = 0.7978845608028654  # sqrt(2/pi)
            act = 0.5 * up * (1.0 + jnp.tanh(c * (up + 0.044715 * up * up * up)))

        # Partial down-projection for this hidden tile, accumulated in f32.
        acc_ref[...] += jnp.dot(act.astype(wd_ref.dtype), wd_ref[...],
                                preferred_element_type=jnp.float32)

        @pl.when(hi == pl.num_programs(1) - 1)
        def _finalize():
            out = acc_ref[...]
            if has_bias:
                out = out + bd_ref[...].astype(jnp.float32)
            out_ref[...] = out.astype(out_ref.dtype)

    return kernel


# ------------------------------- JAX wrapper -------------------------------- #

def mlp_forward(hidden_states, w_up, w_down, b_up=None, b_down=None, *,
                gated=True, tm=256, th=256, vmem_limit_bytes=None):
    """Fused MLP forward.

    hidden_states: [T, E]
    w_up:          [E, 2H] if gated else [E, H]   (fused gate|lin when gated)
    w_down:        [H, E]
    b_up/b_down:   optional biases ([2H] / [H] and [E]); None => no bias path.
    """
    T, E = hidden_states.shape
    H = w_down.shape[0]
    up_out = w_up.shape[1]
    assert up_out == (2 * H if gated else H)
    assert (b_up is None) == (b_down is None)
    has_bias = b_up is not None
    dtype = hidden_states.dtype
    itemsize = jnp.dtype(dtype).itemsize

    tm = min(tm, T)
    th = min(th, H)
    assert T % tm == 0 and H % th == 0, "token / hidden dims must tile evenly"

    grid = (T // tm, H // th)        # (token tiles, hidden tiles); hidden is last

    tok_spec = pl.BlockSpec((tm, E), lambda i, h: (i, 0))      # resident across h
    wcol_spec = pl.BlockSpec((E, th), lambda i, h: (0, h))     # streamed over h
    bcol_spec = pl.BlockSpec((1, th), lambda i, h: (0, h))
    wrow_spec = pl.BlockSpec((th, E), lambda i, h: (h, 0))     # streamed over h
    brow_spec = pl.BlockSpec((1, E), lambda i, h: (0, 0))      # constant

    operands = [hidden_states]
    in_specs = [tok_spec]

    if gated:
        # Split the fused gate|lin weight outside the kernel (free XLA slice);
        # avoids in-kernel slices and halves the peak f32 intermediate.
        operands += [w_up[:, :H], w_up[:, H:]]
        in_specs += [wcol_spec, wcol_spec]
        if has_bias:
            b_up2 = jnp.reshape(b_up, (1, up_out))
            operands += [b_up2[:, :H], b_up2[:, H:]]
            in_specs += [bcol_spec, bcol_spec]
    else:
        operands += [w_up]
        in_specs += [wcol_spec]
        if has_bias:
            operands += [jnp.reshape(b_up, (1, H))]
            in_specs += [bcol_spec]

    operands += [w_down]
    in_specs += [wrow_spec]
    if has_bias:
        operands += [jnp.reshape(b_down, (1, E))]
        in_specs += [brow_spec]

    flops = 2 * T * E * up_out + 2 * T * H * E
    bytes_accessed = (T * E + E * up_out + H * E + T * E
                      + (up_out + E if has_bias else 0)) * itemsize
    cost = pl.CostEstimate(flops=flops, transcendentals=T * H,  # one tanh / elem
                           bytes_accessed=bytes_accessed)

    compiler_params = pltpu.CompilerParams(
        dimension_semantics=("parallel", "arbitrary"),
        vmem_limit_bytes=vmem_limit_bytes)

    return pl.pallas_call(
        _make_mlp_kernel(gated, has_bias),
        out_shape=jax.ShapeDtypeStruct((T, E), dtype),
        grid=grid,
        in_specs=in_specs,
        out_specs=pl.BlockSpec((tm, E), lambda i, h: (i, 0)),
        scratch_shapes=[pltpu.VMEM((tm, E), jnp.float32)],   # f32 accumulator
        compiler_params=compiler_params,
        cost_estimate=cost,
    )(*operands)


# ------------------------------ reference (jnp) ----------------------------- #

def mlp_ref(x, w_up, w_down, b_up=None, b_down=None, *, gated=True):
    up = jnp.dot(x, w_up, preferred_element_type=jnp.float32)
    if b_up is not None:
        up = up + b_up.astype(jnp.float32)
    if gated:
        half = up.shape[-1] // 2
        g, l = up[:, :half], up[:, half:]
        act = g * jax.nn.sigmoid(g) * l
    else:
        c = 0.7978845608028654
        act = 0.5 * up * (1.0 + jnp.tanh(c * (up + 0.044715 * up * up * up)))
    out = jnp.dot(act.astype(w_down.dtype), w_down,
                  preferred_element_type=jnp.float32)
    if b_down is not None:
        out = out + b_down.astype(jnp.float32)
    return out   # f32


# --------------------------------- driver ----------------------------------- #

if __name__ == "__main__":
    # Small config: embedding_dim=256, mlp_hidden_dim=512, 512 tokens, world_size=1.
    T, E, H = 512, 256, 512
    tm, th = 256, 256          # grid = (2, 2): 2 token tiles x 2 hidden tiles
    dtype = jnp.bfloat16

    key = jax.random.PRNGKey(0)
    kx, ku_g, kd_g, ku_p, kd_p, kb1, kb2, kb3, kb4 = jax.random.split(key, 9)

    x = jax.random.normal(kx, (T, E), jnp.float32).astype(dtype)

    # --- gated MLP weights (use_gated_mlp=True -> SiluAndMul) ---
    w_up_g = (jax.random.normal(ku_g, (E, 2 * H), jnp.float32) * (E ** -0.5)).astype(dtype)
    w_down_g = (jax.random.normal(kd_g, (H, E), jnp.float32) * (H ** -0.5)).astype(dtype)
    b_up_g = (0.1 * jax.random.normal(kb1, (2 * H,), jnp.float32)).astype(dtype)
    b_down_g = (0.1 * jax.random.normal(kb2, (E,), jnp.float32)).astype(dtype)

    # --- non-gated MLP weights (use_gated_mlp=False -> GELU) ---
    w_up_p = (jax.random.normal(ku_p, (E, H), jnp.float32) * (E ** -0.5)).astype(dtype)
    w_down_p = (jax.random.normal(kd_p, (H, E), jnp.float32) * (H ** -0.5)).astype(dtype)
    b_up_p = (0.1 * jax.random.normal(kb3, (H,), jnp.float32)).astype(dtype)
    b_down_p = (0.1 * jax.random.normal(kb4, (E,), jnp.float32)).astype(dtype)

    cases = [
        ("gated/no-bias", dict(gated=True), (x, w_up_g, w_down_g, None, None)),
        ("gated/bias", dict(gated=True), (x, w_up_g, w_down_g, b_up_g, b_down_g)),
        ("gelu/no-bias", dict(gated=False), (x, w_up_p, w_down_p, None, None)),
        ("gelu/bias", dict(gated=False), (x, w_up_p, w_down_p, b_up_p, b_down_p)),
    ]

    for name, kw, args in cases:
        out = mlp_forward(*args, tm=tm, th=th, **kw)
        jax.block_until_ready(out)
        assert out.shape == (T, E) and out.dtype == dtype
        ref = mlp_ref(*args, **kw)
        err = float(jnp.max(jnp.abs(out.astype(jnp.float32) - ref)))
        assert err < 1e-1, f"{name} mismatch: max abs err {err}"

    print("KERNEL_OK")
</pallas_src>

<mosaic_0001>
module attributes {stable_mosaic.version = 11 : i64} {
  func.func @kernel(%arg0: i32, %arg1: i32, %arg2: memref<256x256xbf16, #tpu.memory_space<vmem>>, %arg3: memref<256x256xbf16, #tpu.memory_space<vmem>>, %arg4: memref<256x256xbf16, #tpu.memory_space<vmem>>, %arg5: memref<256x256xbf16, #tpu.memory_space<vmem>>, %arg6: memref<256x256xbf16, #tpu.memory_space<vmem>>, %arg7: memref<256x256xf32, #tpu.memory_space<vmem>>) attributes {dimension_semantics = [#tpu.dimension_semantics<parallel>, #tpu.dimension_semantics<arbitrary>], iteration_bounds = array<i64: 2, 2>, scalar_prefetch = 0 : i64, scratch_operands = 1 : i64, tpu.core_type = #tpu.core_type<tc>, window_params = [{transform_indices = @transform_0, window_bounds = array<i64: 256, 256>}, {transform_indices = @transform_1, window_bounds = array<i64: 256, 256>}, {transform_indices = @transform_2, window_bounds = array<i64: 256, 256>}, {transform_indices = @transform_3, window_bounds = array<i64: 256, 256>}, {transform_indices = @transform_4, window_bounds = array<i64: 256, 256>}]} {
    %c0_i32 = arith.constant 0 : i32
    %0 = arith.cmpi eq, %arg1, %c0_i32 : i32
    %1 = arith.extui %0 : i1 to i32
    %c0_i32_0 = arith.constant 0 : i32
    %2 = arith.cmpi ne, %1, %c0_i32_0 : i32
    scf.if %2 {
      %cst_18 = arith.constant 0.000000e+00 : f32
      %26 = vector.broadcast %cst_18 : f32 to vector<256x256xf32>
      %c0_19 = arith.constant 0 : index
      %c0_20 = arith.constant 0 : index
      %27 = vector.load %arg7[%c0_19, %c0_20] : memref<256x256xf32, #tpu.memory_space<vmem>>, vector<256x256xf32>
      tpu.vector_store %arg7[%c0_19, %c0_20], %26 {strides = array<i32>} : memref<256x256xf32, #tpu.memory_space<vmem>>, vector<256x256xf32>,
    } else {
    }
    %c0 = arith.constant 0 : index
    %c0_1 = arith.constant 0 : index
    %3 = vector.load %arg2[%c0, %c0_1] : memref<256x256xbf16, #tpu.memory_space<vmem>>, vector<256x256xbf16>
    %c0_2 = arith.constant 0 : index
    %c0_3 = arith.constant 0 : index
    %4 = vector.load %arg3[%c0_2, %c0_3] : memref<256x256xbf16, #tpu.memory_space<vmem>>, vector<256x256xbf16>
    %cst = arith.constant dense<0.000000e+00> : vector<256x256xf32>
    %5 = tpu.matmul %3, %4, %cst {dimension_numbers = #tpu.dot_dimension_numbers<[1], [0], [0], [1], [0, 0, 1, 1], [], []>} : vector<256x256xbf16>, vector<256x256xbf16>, vector<256x256xf32> -> vector<256x256xf32>
    %c0_4 = arith.constant 0 : index
    %c0_5 = arith.constant 0 : index
    %6 = vector.load %arg4[%c0_4, %c0_5] : memref<256x256xbf16, #tpu.memory_space<vmem>>, vector<256x256xbf16>
    %cst_6 = arith.constant dense<0.000000e+00> : vector<256x256xf32>
    %7 = tpu.matmul %3, %6, %cst_6 {dimension_numbers = #tpu.dot_dimension_numbers<[1], [0], [0], [1], [0, 0, 1, 1], [], []>} : vector<256x256xbf16>, vector<256x256xbf16>, vector<256x256xf32> -> vector<256x256xf32>
    %cst_7 = arith.constant 5.000000e-01 : f32
    %8 = vector.broadcast %cst_7 : f32 to vector<256x256xf32>
    %9 = arith.mulf %8, %5 : vector<256x256xf32>
    %10 = math.tanh %9 : vector<256x256xf32>
    %cst_8 = arith.constant 1.000000e+00 : f32
    %11 = vector.broadcast %cst_8 : f32 to vector<256x256xf32>
    %12 = arith.addf %11, %10 : vector<256x256xf32>
    %cst_9 = arith.constant 5.000000e-01 : f32
    %13 = vector.broadcast %cst_9 : f32 to vector<256x256xf32>
    %14 = arith.mulf %13, %12 : vector<256x256xf32>
    %15 = arith.mulf %5, %14 : vector<256x256xf32>
    %16 = arith.mulf %15, %7 : vector<256x256xf32>
    %c0_10 = arith.constant 0 : index
    %c0_11 = arith.constant 0 : index
    %17 = vector.load %arg7[%c0_10, %c0_11] : memref<256x256xf32, #tpu.memory_space<vmem>>, vector<256x256xf32>
    %18 = arith.truncf %16 : vector<256x256xf32> to vector<256x256xbf16>
    %c0_12 = arith.constant 0 : index
    %c0_13 = arith.constant 0 : index
    %19 = vector.load %arg5[%c0_12, %c0_13] : memref<256x256xbf16, #tpu.memory_space<vmem>>, vector<256x256xbf16>
    %cst_14 = arith.constant dense<0.000000e+00> : vector<256x256xf32>
    %20 = tpu.matmul %18, %19, %cst_14 {dimension_numbers = #tpu.dot_dimension_numbers<[1], [0], [0], [1], [0, 0, 1, 1], [], []>} : vector<256x256xbf16>, vector<256x256xbf16>, vector<256x256xf32> -> vector<256x256xf32>
    %21 = arith.addf %17, %20 : vector<256x256xf32>
    %c0_15 = arith.constant 0 : index
    %c0_16 = arith.constant 0 : index
    %22 = vector.load %arg7[%c0_15, %c0_16] : memref<256x256xf32, #tpu.memory_space<vmem>>, vector<256x256xf32>
    tpu.vector_store %arg7[%c0_15, %c0_16], %21 {strides = array<i32>} : memref<256x256xf32, #tpu.memory_space<vmem>>, vector<256x256xf32>,
    %c1_i32 = arith.constant 1 : i32
    %23 = arith.cmpi eq, %arg1, %c1_i32 : i32
    %24 = arith.extui %23 : i1 to i32
    %c0_i32_17 = arith.constant 0 : i32
    %25 = arith.cmpi ne, %24, %c0_i32_17 : i32
    scf.if %25 {
      %c0_18 = arith.constant 0 : index
      %c0_19 = arith.constant 0 : index
      %26 = vector.load %arg7[%c0_18, %c0_19] : memref<256x256xf32, #tpu.memory_space<vmem>>, vector<256x256xf32>
      %27 = arith.truncf %26 : vector<256x256xf32> to vector<256x256xbf16>
      %c0_20 = arith.constant 0 : index
      %c0_21 = arith.constant 0 : index
      %28 = vector.load %arg6[%c0_20, %c0_21] : memref<256x256xbf16, #tpu.memory_space<vmem>>, vector<256x256xbf16>
      tpu.vector_store %arg6[%c0_20, %c0_21], %27 {strides = array<i32>} : memref<256x256xbf16, #tpu.memory_space<vmem>>, vector<256x256xbf16>,
    } else {
    }
    return
  }
  func.func @transform_0(%arg0: i32, %arg1: i32) -> (i32, i32) {
    %c0_i32 = arith.constant 0 : i32
    %c0_i32_0 = arith.constant 0 : i32
    return %arg0, %c0_i32 : i32, i32
  }
  func.func @transform_1(%arg0: i32, %arg1: i32) -> (i32, i32) {
    %c0_i32 = arith.constant 0 : i32
    %c0_i32_0 = arith.constant 0 : i32
    return %c0_i32, %arg1 : i32, i32
  }
  func.func @transform_2(%arg0: i32, %arg1: i32) -> (i32, i32) {
    %c0_i32 = arith.constant 0 : i32
    %c0_i32_0 = arith.constant 0 : i32
    return %c0_i32, %arg1 : i32, i32
  }
  func.func @transform_3(%arg0: i32, %arg1: i32) -> (i32, i32) {
    %c0_i32 = arith.constant 0 : i32
    %c0_i32_0 = arith.constant 0 : i32
    return %arg1, %c0_i32 : i32, i32
  }
  func.func @transform_4(%arg0: i32, %arg1: i32) -> (i32, i32) {
    %c0_i32 = arith.constant 0 : i32
    %c0_i32_0 = arith.constant 0 : i32
    return %arg0, %c0_i32 : i32, i32
  }
}

</mosaic_0001>

<bundles_post_ra>
// kernel: tpu_custom_call.1
= control target key start
LH: loop header
LB: loop body
LE: loop exit
PB: predicated region body
PF: predicated region fallthrough
CT: control target
= control target key end

     0   :  { %s4839_s0 = inlined_call_operand.hbm [shape: bf16[512,256], index: 0, kind: input, shape index: {}]   ;;  %s4840_s1 = inlined_call_operand.hbm [shape: bf16[256,512], index: 1, kind: input, shape index: {}]   ;;  %s4841_s2 = inlined_call_operand.hbm [shape: bf16[256,512], index: 2, kind: input, shape index: {}]   ;;  %s4842_s3 = inlined_call_operand.hbm [shape: bf16[512,256], index: 3, kind: input, shape index: {}]   ;;  %s4843_s4 = inlined_call_operand.hbm [shape: bf16[512,256], index: 4, kind: output, shape index: {}]  }
   0x1   :  { %4891 = sst [smem:[#allocation51_spill]] %s4840_s1 }
   0x2   :  { %4892 = sst [smem:[#allocation52_spill]] %s4843_s4 }
   0x3   :  { %9 = vsyncpa [#allocation4], 0 }
   0x4   :  { %11 = vsyncpa [#allocation4 + $0x1], 0 }
   0x5   :  { %12 = vsyncpa [#allocation7], 0 }
   0x6   :  { %14 = vsyncpa [#allocation7 + $0x1], 0 }
   0x7   :  { %15 = vsyncpa [#allocation10], 0 }
   0x8   :  { %17 = vsyncpa [#allocation10 + $0x1], 0 }
   0x9   :  { %18 = vsyncpa [#allocation5], 0 }
   0xa   :  { %20 = vsyncpa [#allocation5 + $0x1], 0  ;;  %s3827_s15 = smov 0   ;;  %s3829_s16 = smov 0  }
   0xb   :  { %s3831_s17 = smov 0   ;;  %s3833_s18 = smov 0  }
   0xc   :  { %s3835_s19 = smov 0   ;;  %s3837_s20 = smov 0  }
   0xd   :  { %s3839_s21 = smov 0   ;;  %s3841_s22 = smov 0  }
   0xe   :  { %s3843_s23 = smov 0   ;;  %s3845_s24 = smov 0  }
   0xf   :  { %s3847_s25 = smov 0  }
  0x10 LB: > { %4893 = sst [smem:[#allocation16_spill]] %s3753_s16  ;;  %s35_s26 = sadd.s32 1, %s3781_s23  ;;  %s3789_s25 = sphi %s3847_s25, %s26_s25   ;;  %s3785_s24 = sphi %s3845_s24, %s4997_s24   ;;  %s3781_s23 = sphi %s3843_s23, %s4996_s23   ;;  %s3777_s22 = sphi %s3841_s22, %s4988_s22   ;;  %s3773_s21 = sphi %s3839_s21, %s4995_s21   ;;  %s3769_s20 = sphi %s3837_s20, %s4987_s20   ;;  %s3765_s19 = sphi %s3835_s19, %s4994_s19   ;;  %s3761_s18 = sphi %s3833_s18, %s4993_s18   ;;  %s3757_s17 = sphi %s3831_s17, %s4992_s17   ;;  %s3753_s16 = sphi %s3829_s16, %s4991_s16   ;;  %s3749_s15 = sphi %s3827_s15, %s4984_s15  }
  0x11   : > { %4894 = sst [smem:[#allocation17_spill]] %s3769_s20  ;;  %p4848_p0 = scmp.eq.s32.totalorder %s3789_s25, 0 }
  0x12   : > { %4895 = sst [smem:[#allocation18_spill]] %s3773_s21  ;;  %p3884_p1 = scmp.ge.s32.totalorder %s35_s26, 2 }
  0x13   : > { %4896 = sst [smem:[#allocation19_spill]] %s3777_s22  ;;  %s71_s28 = sadd.s32 1, %s3757_s17 }
  0x14   : > { %4897 = sst [smem:[#allocation20_spill]] %s3785_s24  ;;  %p78_p2 = scmp.ne.s32.totalorder %s3757_s17, %s3753_s16 }
  0x15   : > { %s4898_s27 = scalar_select %p3884_p1, 1, 0 }
  0x16   : > { %s4999_s26 = smov (%p3884_p1, %s35_s26), 0  ;;  %p80_p4 = por %p78_p2, %p4848_p0 }
  0x17   : > { %4899 = sst [smem:[#allocation21_spill]] %s4999_s26  ;;  %s68_s29 = ssub.s32 %s3781_s23, %s4999_s26 }
  0x18   : > { %p4847_p5 = scmp.lt.s32.totalorder %s3789_s25, 4  ;;  %p69_p6 = scmp.eq.s32.totalorder %s68_s29, 0 }
  0x19   : > { %s208_s30 = sand.u32 1, %s3789_s25   ;;  %s4844_s6 = sand.u32 1, %s3757_s17  }
  0x1a   : > { %s3904_s5 = scalar_select %p69_p6, %s3757_s17, %s71_s28  }
  0x1b   : > { %s3909_s7 = sshll.u32 %s4844_s6, 8  ;;  %s3026_s8 = sshll.u32 %s3781_s23, 7 }
  0x1c   : > { %4900 = sst [smem:[#allocation22_spill]] %s3904_s5  ;;  %s4901_s1 = sld [smem:[#allocation51_spill]] }
  0x1d   : > { %s212_s12 = scalar_lea.vmem [#allocation6], %s3909_s7  ;;  %p3920_p7 = pnand %p4847_p5, %p80_p4 }
  0x1e   : > { %s219_s13 = sshll.u32 %s212_s12, 4  ;;  %s3929_s9 = scalar_lea.hbm %s4841_s2, %s3026_s8  ;;  %s3924_s13 = int_to_ptr.vmem [resolvable:$true] %s219_s13 }
  0x1f   : > { %s4902_s14 = scalar_select %p3920_p7, 1, 0 }
  0x20   : > { %s3931_s10 = scalar_lea.sflag [#allocation7], %s208_s30  ;;  %p3937_p9 = pneg %p3920_p7 }
  0x22   : > { %s3915_s11 = scalar_lea.hbm %s4901_s1, %s3026_s8  ;;  %s3544_s4 = scalar_lea.hbm %s4901_s1, 8192 }
  0x23   : > { %s3539_s6 = scalar_lea.hbm %s3915_s11, 4096  ;;  %p3545_p12 = scmp.lt.u32.totalorder %s3915_s11, %s4901_s1 }
  0x24   : > { %p3540_p8 = scmp.ne.s32.totalorder %s3915_s11, %s3539_s6  ;;  %p3546_p13 = scmp.lt.u32.totalorder %s3544_s4, %s3539_s6 }
  0x25   : > { %p3548_p4 = scmp.lt.u32.totalorder %s3539_s6, %s3915_s11 }
  0x26   : > { %p3542_p10 = pnand %p3937_p9, %p3540_p8  ;;  %p3547_p2 = por %p3546_p13, %p3545_p12 }
  0x28   : > { %p3543_p11 = pneg %p3542_p10  ;;  %p3549_p6 = por %p3548_p4, %p3547_p2 }
  0x2a   : > { %p3550_p5 = pnand %p3549_p6, %p3543_p11 }
  0x2c   : > { %3553 = shalt.err (!%p3550_p5)
}
  0x2d   : > { %s3554_s30 = scalar_lea.vmem %s3924_s13, 4096  ;;  %s3791_s26 = smov [#allocation6]  }
  0x2e   : > { %p3555_p8 = scmp.ne.s32.totalorder %s3924_s13, %s3554_s30  ;;  %s3559_s5 = sshll.u32 %s3791_s26, 4  ;;  %s3560_s5 = int_to_ptr.vmem [resolvable:$false] %s3559_s5 }
  0x2f   : > { %s3561_s29 = scalar_lea.vmem %s3560_s5, 8192  ;;  %p3562_p0 = scmp.lt.s32.totalorder %s3924_s13, %s3560_s5 }
  0x30   : > { %p3557_p10 = pnand %p3555_p8, %p3937_p9  ;;  %p3563_p1 = scmp.lt.s32.totalorder %s3561_s29, %s3554_s30 }
  0x32   : > { %p3558_p3 = pneg %p3557_p10  ;;  %p3564_p12 = por %p3563_p1, %p3562_p0 }
  0x34   : > { %p3565_p13 = pnand %p3564_p12, %p3558_p3 }
  0x36   : > { %3568 = shalt.err (!%p3565_p13)
}
  0x37   : > { %s4850_s4 = smov 256   ;;  %s4851_s6 = smov 128  }
  0x38   : > { %s4853_s28 = smov 8   ;;  %p2850_p0 = scmp.ge.s32.totalorder %s3789_s25, 1 }
  0x39   : > { %3112 = dma.hbm_to_vmem [thread:$0]  (!%p3920_p7), %s3915_s11, 4096, %s3924_s13, %s3931_s10, %s4850_s4, %s4851_s6, %s4853_s28  }
  0x3a   : > { %p270_p1 = scmp.lt.s32.totalorder %s3789_s25, 5  ;;  %s3971_s30 = sadd.s32 4294967295, %s3789_s25  }
  0x3b   : > { %s2833_s26 = sadd.s32 4294967294, %s3789_s25   ;;  %s38_s5 = sadd.s32 1, %s3785_s24 }
  0x3c   : > { %p3966_p3 = pnand %p2850_p0, %p270_p1  ;;  %p4905_p5 = scmp.ne.s32.totalorder %s4898_s27, 0 }
  0x3d   : > { %s45_s11 = sadd.s32 1, %s3769_s20  ;;  %p52_p11 = scmp.ne.s32.totalorder %s3769_s20, %s3765_s19 }
  0x3e   : > { %s4904_s8 = scalar_select %p3966_p3, 1, 0 }
  0x3f   : > { %s5001_s5 = smov (!%p4905_p5, %s38_s5), %s3785_s24  ;;  %p58_p4 = scmp.ne.s32.totalorder %s3765_s19, %s3761_s18 }
  0x40   : > { %p40_p2 = scmp.ge.s32.totalorder %s5001_s5, 2  ;;  %p4906_p6 = scmp.eq.s32.totalorder %s3789_s25, 0 }
  0x41   : > { %p59_p10 = scmp.eq.s32.totalorder %s3971_s30, 0  ;;  %p4910_p13 = scmp.ne.s32.totalorder %s3753_s16, %s3749_s15 }
  0x42   : > { %p3985_p8 = por %p4906_p6, %p52_p11  ;;  %s5003_s5 = smov (%p40_p2, %s5001_s5), 0 }
  0x43   : > { %4908 = sst [smem:[#allocation23_spill]] %s5003_s5  ;;  %p3995_p12 = por %p59_p10, %p58_p4 }
  0x44   : > { %p4002_p0 = por %p4910_p13, %p59_p10  ;;  %s42_s4 = ssub.s32 %s3785_s24, %s5003_s5 }
  0x45   : > { %s4909_s27 = scalar_select %p3995_p12, 1, 0 }
  0x46   : > { %s4911_s29 = scalar_select %p4002_p0, 1, 0 }
  0x47   : > { %p160_p1 = scmp.eq.s32.totalorder %s3971_s30, 3  ;;  %p43_p5 = scmp.eq.s32.totalorder %s42_s4, 0 }
  0x48   : > { %4912 = sst [smem:[#allocation24_spill]] %s4911_s29  ;;  %p166_p6 = scmp.eq.s32.totalorder %s2833_s26, 3 }
  0x49   : > { %p4009_p2 = por %p160_p1, %p52_p11  ;;  %s186_s28 = sand.u32 1, %s3769_s20  }
  0x4a   : > { %s4015_s1 = scalar_select %p43_p5, %s3769_s20, %s45_s11  }
  0x4b   : > { %s4913_s6 = scalar_select %p4009_p2, 1, 0 }
  0x4c   : > { %4914 = sst [smem:[#allocation25_spill]] %s4015_s1  ;;  %p4020_p3 = por %p166_p6, %p58_p4 }
  0x4d   : > { %s2836_s15 = sshll.u32 %s186_s28, 8  ;;  %s3025_s21 = sshll.u32 %s3785_s24, 12 }
  0x4e   : > { %s4915_s22 = scalar_select %p4020_p3, 1, 0 }
  0x4f   : > { %s4028_s5 = scalar_lea.hbm %s4839_s0, %s3025_s21  ;;  %s190_s4 = scalar_lea.vmem [#allocation3], %s2836_s15 }
  0x50   : > { %s198_s26 = sshll.u32 %s190_s4, 4  ;;  %p4916_p11 = scmp.lt.s32.totalorder %s3789_s25, 4  ;;  %s4038_s26 = int_to_ptr.vmem [resolvable:$true] %s198_s26 }
  0x51   : > { %s233_s24 = scalar_lea.vmem [#allocation8], %s3909_s7  ;;  %s4043_s21 = scalar_lea.sflag [#allocation4], %s186_s28 }
  0x52   : > { %p4034_p10 = pnand %p4916_p11, %p3985_p8  ;;  %s4041_s16 = sshll.u32 %s233_s24, 4  ;;  %s4075_s16 = int_to_ptr.vmem [resolvable:$true] %s4041_s16 }
  0x53   : > { %s3569_s29 = scalar_lea.hbm %s4028_s5, 4096  ;;  %s3574_s4 = scalar_lea.hbm %s4839_s0, 8192 }
  0x54   : > { %p3570_p4 = scmp.ne.s32.totalorder %s4028_s5, %s3569_s29  ;;  %p3571_p13 = pneg %p4034_p10 }
  0x55   : > { %p3575_p5 = scmp.lt.u32.totalorder %s4028_s5, %s4839_s0  ;;  %p3576_p6 = scmp.lt.u32.totalorder %s3574_s4, %s3569_s29 }
  0x56   : > { %p3572_p1 = pnand %p3571_p13, %p3570_p4  ;;  %p3578_p3 = scmp.lt.u32.totalorder %s3569_s29, %s4028_s5 }
  0x57   : > { %p3577_p11 = por %p3576_p6, %p3575_p5 }
  0x58   : > { %p3573_p8 = pneg %p3572_p1 }
  0x59   : > { %p3579_p2 = por %p3578_p3, %p3577_p11 }
  0x5b   : > { %p3580_p0 = pnand %p3579_p2, %p3573_p8 }
  0x5d   : > { %3583 = shalt.err (!%p3580_p0)
}
  0x5e   : > { %s3584_s24 = scalar_lea.vmem %s4038_s26, 4096  ;;  %s3795_s28 = smov [#allocation3]  }
  0x5f   : > { %p3585_p4 = scmp.ne.s32.totalorder %s4038_s26, %s3584_s24  ;;  %s3589_s13 = sshll.u32 %s3795_s28, 4  ;;  %s3590_s13 = int_to_ptr.vmem [resolvable:$false] %s3589_s13 }
  0x60   : > { %s3591_s1 = scalar_lea.vmem %s3590_s13, 8192  ;;  %p3592_p7 = scmp.lt.s32.totalorder %s4038_s26, %s3590_s13 }
  0x61   : > { %p3587_p1 = pnand %p3585_p4, %p3571_p13  ;;  %p3593_p5 = scmp.lt.s32.totalorder %s3591_s1, %s3584_s24 }
  0x63   : > { %p3588_p12 = pneg %p3587_p1  ;;  %p3594_p6 = por %p3593_p5, %p3592_p7 }
  0x65   : > { %p3595_p3 = pnand %p3594_p6, %p3588_p12 }
  0x67   : > { %3598 = shalt.err (!%p3595_p3)
}
  0x68   : > { %s4918_s20 = smov 8   ;;  %s4919_s29 = smov 128  }
  0x69   : > { %3109 = dma.hbm_to_vmem [thread:$0]  (!%p4034_p10), %s4028_s5, 4096, %s4038_s26, %s4043_s21, %s4919_s29, %s4919_s29, %s4918_s20  }
  0x6a   : > { %s3599_s15 = scalar_lea.hbm %s3929_s9, 4096  ;;  %s3604_s24 = scalar_lea.hbm %s4841_s2, 8192 }
  0x6b   : > { %p3600_p7 = scmp.ne.s32.totalorder %s3929_s9, %s3599_s15  ;;  %p3605_p2 = scmp.lt.u32.totalorder %s3929_s9, %s4841_s2 }
  0x6c   : > { %p3606_p13 = scmp.lt.u32.totalorder %s3604_s24, %s3599_s15  ;;  %p3608_p11 = scmp.lt.u32.totalorder %s3599_s15, %s3929_s9 }
  0x6d   : > { %p3602_p12 = pnand %p3600_p7, %p3937_p9 }
  0x6e   : > { %p3607_p8 = por %p3606_p13, %p3605_p2 }
  0x6f   : > { %p3603_p0 = pneg %p3602_p12 }
  0x70   : > { %p3609_p4 = por %p3608_p11, %p3607_p8 }
  0x72   : > { %p3610_p10 = pnand %p3609_p4, %p3603_p0 }
  0x74   : > { %3613 = shalt.err (!%p3610_p10)
}
  0x75   : > { %s3614_s5 = scalar_lea.vmem %s4075_s16, 4096  ;;  %s3796_s26 = smov [#allocation8]  }
  0x76   : > { %p3615_p1 = scmp.ne.s32.totalorder %s4075_s16, %s3614_s5  ;;  %s3619_s21 = sshll.u32 %s3796_s26, 4  ;;  %s3620_s21 = int_to_ptr.vmem [resolvable:$false] %s3619_s21 }
  0x77   : > { %s3621_s1 = scalar_lea.vmem %s3620_s21, 8192  ;;  %p3622_p3 = scmp.lt.s32.totalorder %s4075_s16, %s3620_s21 }
  0x78   : > { %p3617_p5 = pnand %p3615_p1, %p3937_p9  ;;  %p3623_p7 = scmp.lt.s32.totalorder %s3621_s1, %s3614_s5 }
  0x7a   : > { %p3618_p6 = pneg %p3617_p5  ;;  %p3624_p12 = por %p3623_p7, %p3622_p3 }
  0x7c   : > { %p3625_p2 = pnand %p3624_p12, %p3618_p6 }
  0x7e   : > { %3628 = shalt.err (!%p3625_p2)
}
  0x7f   : > { %p4920_p0 = scmp.ne.s32.totalorder %s4902_s14, 0  ;;  %s4921_s15 = smov 256  }
  0x80   : > { %s3029_s11 = sshll.u32 %s3781_s23, 12  ;;  %s254_s13 = scalar_lea.vmem [#allocation9], %s3909_s7 }
  0x81   : > { %3115 = dma.hbm_to_vmem [thread:$0]  (!%p4920_p0), %s3929_s9, 4096, %s4075_s16, %s3931_s10, %s4921_s15, %s4919_s29, %s4918_s20  }
  0x82   : > { %s4106_s28 = scalar_lea.hbm %s4842_s3, %s3029_s11  ;;  %s262_s5 = sshll.u32 %s254_s13, 4  ;;  %s4109_s5 = int_to_ptr.vmem [resolvable:$true] %s262_s5 }
  0x83   : > { %s4922_s26 = sand.u32 1, %s3757_s17   ;;  %s3629_s1 = scalar_lea.hbm %s4106_s28, 4096 }
  0x84   : > { %s4113_s21 = scalar_lea.sflag [#allocation10], %s4922_s26  ;;  %p3630_p13 = scmp.ne.s32.totalorder %s4106_s28, %s3629_s1 }
  0x85   : > { %s3634_s16 = scalar_lea.hbm %s4842_s3, 8192  ;;  %p3635_p4 = scmp.lt.u32.totalorder %s4106_s28, %s4842_s3 }
  0x86   : > { %p3632_p8 = pnand %p3630_p13, %p3937_p9  ;;  %p3636_p10 = scmp.lt.u32.totalorder %s3634_s16, %s3629_s1 }
  0x87   : > { %p3638_p5 = scmp.lt.u32.totalorder %s3629_s1, %s4106_s28 }
  0x88   : > { %p3633_p11 = pneg %p3632_p8  ;;  %p3637_p1 = por %p3636_p10, %p3635_p4 }
  0x8a   : > { %p3639_p6 = por %p3638_p5, %p3637_p1 }
  0x8c   : > { %p3640_p3 = pnand %p3639_p6, %p3633_p11 }
  0x8e   : > { %3643 = shalt.err (!%p3640_p3)
}
  0x8f   : > { %s3644_s7 = scalar_lea.vmem %s4109_s5, 4096  ;;  %s3797_s4 = smov [#allocation9]  }
  0x90   : > { %p3645_p7 = scmp.ne.s32.totalorder %s4109_s5, %s3644_s7  ;;  %s3649_s24 = sshll.u32 %s3797_s4, 4  ;;  %s3650_s24 = int_to_ptr.vmem [resolvable:$false] %s3649_s24 }
  0x91   : > { %s3651_s13 = scalar_lea.vmem %s3650_s24, 8192  ;;  %p3652_p13 = scmp.lt.s32.totalorder %s4109_s5, %s3650_s24 }
  0x92   : > { %p3647_p12 = pnand %p3645_p7, %p3937_p9  ;;  %p3653_p8 = scmp.lt.s32.totalorder %s3651_s13, %s3644_s7 }
  0x94   : > { %p3648_p2 = pneg %p3647_p12  ;;  %p3654_p4 = por %p3653_p8, %p3652_p13 }
  0x96   : > { %p3655_p10 = pnand %p3654_p4, %p3648_p2 }
  0x98   : > { %3658 = shalt.err (!%p3655_p10)
}
  0x99   : > { %3118 = dma.hbm_to_vmem [thread:$0]  (!%p4920_p0), %s4106_s28, 4096, %s4109_s5, %s4113_s21, %s4919_s29, %s4919_s29, %s4918_s20  }
  0x9a   : > { %p4923_p9 = scmp.ne.s32.totalorder %s4904_s8, 0 }
  0x9c   : > { %274 = sbr.rel (%p4923_p9) target bundleno = 945 (0x3b1), region = 36 }
  0xa3   : > { %s4143_s12 = sand.u32 1, %s3765_s19   ;;  %p4924_p11 = scmp.ne.s32.totalorder %s4909_s27, 0 }
  0xa4   : > { %s2851_s26 = sshll.u32 %s4143_s12, 8  ;;  %s277_s1 = scalar_lea.sflag [#allocation4], %s4143_s12 }
  0xa5   : > { %s4147_s9 = scalar_lea.vmem [#allocation3], %s2851_s26 }
  0xa6   : > { %3732 = dma.done.wait (%p4924_p11), %s277_s1, 4096  }
  0xa7   : > { %3734 = vsyncadd (%p4924_p11), %s277_s1, 4294963200  ;;  %s4925_s14 = sld [smem:[#allocation16_spill]]  ;;  %s4926_s20 = sld [smem:[#allocation24_spill]] }
  0xa8   : > { %s285_s8 = sand.u32 1, %s3971_s30  }
  0xa9   : > { %s286_s5 = scalar_lea.sflag [#allocation7], %s285_s8 }
  0xad   : > { %s287_s29 = sand.u32 1, %s4925_s14   ;;  %p4927_p0 = scmp.ne.s32.totalorder %s4926_s20, 0 }
  0xae   : > { %s2852_s28 = sshll.u32 %s287_s29, 8 }
  0xaf   : > { %s4155_s21 = scalar_lea.vmem [#allocation6], %s2852_s28 }
  0xb0   : > { %3736 = dma.done.wait (%p4927_p0), %s286_s5, 8192  }
  0xb1   : > { %3738 = vsyncadd (%p4927_p0), %s286_s5, 4294959104  ;;  %s4161_s10 = scalar_lea.vmem [#allocation8], %s2852_s28  ;;  %s304_s16 = scalar_lea.sflag [#allocation10], %s287_s29 }
  0xb2   : > { %s4163_s27 = scalar_lea.vmem [#allocation9], %s2852_s28 }
  0xb3   : > { %3740 = dma.done.wait (%p4927_p0), %s304_s16, 4096  }
  0xb4   : > { %3742 = vsyncadd (%p4927_p0), %s304_s16, 4294963200  ;;  %s4169_s30 = scalar_lea.vmem [#allocation11], %s2851_s26  ;;  %s4928_s15 = sld [smem:[#allocation18_spill]] }
  0xba   : > { %p2856_p1 = scmp.ne.s32.totalorder %s4928_s15, 0 }
  0xbb   : > { %v3798_v0 = vmov (!%p2856_p1), 0.0  }
  0xbc   : > { %355 = sbr.rel (%p2856_p1) target bundleno = 220 (0xdc), region = 56  ;;  %356 = vst [vmem:[#allocation2] sm:$0xff] (!%p2856_p1), %v3798_v0  ;;  %357 = vst [vmem:[#allocation2 + $0x8] sm:$0xff] (!%p2856_p1), %v3798_v0 }
  0xbd   : > { %358 = vst [vmem:[#allocation2 + $0x10] sm:$0xff] (!%p2856_p1), %v3798_v0  ;;  %359 = vst [vmem:[#allocation2 + $0x18] sm:$0xff] (!%p2856_p1), %v3798_v0 }
  0xbe   : > { %360 = vst [vmem:[#allocation2 + $0x20] sm:$0xff] (!%p2856_p1), %v3798_v0  ;;  %361 = vst [vmem:[#allocation2 + $0x28] sm:$0xff] (!%p2856_p1), %v3798_v0 }
  0xbf   : > { %362 = vst [vmem:[#allocation2 + $0x30] sm:$0xff] (!%p2856_p1), %v3798_v0  ;;  %363 = vst [vmem:[#allocation2 + $0x38] sm:$0xff] (!%p2856_p1), %v3798_v0 }
  0xc0   : > { %364 = vst [vmem:[#allocation2 + $0x40] sm:$0xff] (!%p2856_p1), %v3798_v0  ;;  %365 = vst [vmem:[#allocation2 + $0x48] sm:$0xff] (!%p2856_p1), %v3798_v0 }
  0xc1   : > { %366 = vst [vmem:[#allocation2 + $0x50] sm:$0xff] (!%p2856_p1), %v3798_v0  ;;  %367 = vst [vmem:[#allocation2 + $0x58] sm:$0xff] (!%p2856_p1), %v3798_v0 }
  0xc2   : > { %368 = vst [vmem:[#allocation2 + $0x60] sm:$0xff] (!%p2856_p1), %v3798_v0  ;;  %369 = vst [vmem:[#allocation2 + $0x68] sm:$0xff] (!%p2856_p1), %v3798_v0 }
  0xc3   : > { %370 = vst [vmem:[#allocation2 + $0x70] sm:$0xff] %v3798_v0  ;;  %371 = vst [vmem:[#allocation2 + $0x78] sm:$0xff] %v3798_v0 }
  0xc4   : > { %372 = vst [vmem:[#allocation2 + $0x80] sm:$0xff] %v3798_v0  ;;  %373 = vst [vmem:[#allocation2 + $0x88] sm:$0xff] %v3798_v0 }
  0xc5   : > { %374 = vst [vmem:[#allocation2 + $0x90] sm:$0xff] %v3798_v0  ;;  %375 = vst [vmem:[#allocation2 + $0x98] sm:$0xff] %v3798_v0 }
  0xc6   : > { %376 = vst [vmem:[#allocation2 + $0xa0] sm:$0xff] %v3798_v0  ;;  %377 = vst [vmem:[#allocation2 + $0xa8] sm:$0xff] %v3798_v0 }
  0xc7   : > { %378 = vst [vmem:[#allocation2 + $0xb0] sm:$0xff] %v3798_v0  ;;  %379 = vst [vmem:[#allocation2 + $0xb8] sm:$0xff] %v3798_v0 }
  0xc8   : > { %380 = vst [vmem:[#allocation2 + $0xc0] sm:$0xff] %v3798_v0  ;;  %381 = vst [vmem:[#allocation2 + $0xc8] sm:$0xff] %v3798_v0 }
  0xc9   : > { %382 = vst [vmem:[#allocation2 + $0xd0] sm:$0xff] %v3798_v0  ;;  %383 = vst [vmem:[#allocation2 + $0xd8] sm:$0xff] %v3798_v0 }
  0xca   : > { %384 = vst [vmem:[#allocation2 + $0xe0] sm:$0xff] %v3798_v0  ;;  %385 = vst [vmem:[#allocation2 + $0xe8] sm:$0xff] %v3798_v0 }
  0xcb   : > { %386 = vst [vmem:[#allocation2 + $0xf0] sm:$0xff] %v3798_v0  ;;  %387 = vst [vmem:[#allocation2 + $0xf8] sm:$0xff] %v3798_v0 }
  0xcc   : > { %388 = vst [vmem:[#allocation2 + $0x100] sm:$0xff] %v3798_v0  ;;  %389 = vst [vmem:[#allocation2 + $0x108] sm:$0xff] %v3798_v0 }
  0xcd   : > { %390 = vst [vmem:[#allocation2 + $0x110] sm:$0xff] %v3798_v0  ;;  %391 = vst [vmem:[#allocation2 + $0x118] sm:$0xff] %v3798_v0 }
  0xce   : > { %392 = vst [vmem:[#allocation2 + $0x120] sm:$0xff] %v3798_v0  ;;  %393 = vst [vmem:[#allocation2 + $0x128] sm:$0xff] %v3798_v0 }
  0xcf   : > { %394 = vst [vmem:[#allocation2 + $0x130] sm:$0xff] %v3798_v0  ;;  %395 = vst [vmem:[#allocation2 + $0x138] sm:$0xff] %v3798_v0 }
  0xd0   : > { %396 = vst [vmem:[#allocation2 + $0x140] sm:$0xff] %v3798_v0  ;;  %397 = vst [vmem:[#allocation2 + $0x148] sm:$0xff] %v3798_v0 }
  0xd1   : > { %398 = vst [vmem:[#allocation2 + $0x150] sm:$0xff] %v3798_v0  ;;  %399 = vst [vmem:[#allocation2 + $0x158] sm:$0xff] %v3798_v0 }
  0xd2   : > { %400 = vst [vmem:[#allocation2 + $0x160] sm:$0xff] %v3798_v0  ;;  %401 = vst [vmem:[#allocation2 + $0x168] sm:$0xff] %v3798_v0 }
  0xd3   : > { %402 = vst [vmem:[#allocation2 + $0x170] sm:$0xff] %v3798_v0  ;;  %403 = vst [vmem:[#allocation2 + $0x178] sm:$0xff] %v3798_v0 }
  0xd4   : > { %404 = vst [vmem:[#allocation2 + $0x180] sm:$0xff] %v3798_v0  ;;  %405 = vst [vmem:[#allocation2 + $0x188] sm:$0xff] %v3798_v0 }
  0xd5   : > { %406 = vst [vmem:[#allocation2 + $0x190] sm:$0xff] %v3798_v0  ;;  %407 = vst [vmem:[#allocation2 + $0x198] sm:$0xff] %v3798_v0 }
  0xd6   : > { %408 = vst [vmem:[#allocation2 + $0x1a0] sm:$0xff] %v3798_v0  ;;  %409 = vst [vmem:[#allocation2 + $0x1a8] sm:$0xff] %v3798_v0 }
  0xd7   : > { %410 = vst [vmem:[#allocation2 + $0x1b0] sm:$0xff] %v3798_v0  ;;  %411 = vst [vmem:[#allocation2 + $0x1b8] sm:$0xff] %v3798_v0 }
  0xd8   : > { %412 = vst [vmem:[#allocation2 + $0x1c0] sm:$0xff] %v3798_v0  ;;  %413 = vst [vmem:[#allocation2 + $0x1c8] sm:$0xff] %v3798_v0 }
  0xd9   : > { %414 = vst [vmem:[#allocation2 + $0x1d0] sm:$0xff] %v3798_v0  ;;  %415 = vst [vmem:[#allocation2 + $0x1d8] sm:$0xff] %v3798_v0 }
  0xda   : > { %416 = vst [vmem:[#allocation2 + $0x1e0] sm:$0xff] %v3798_v0  ;;  %417 = vst [vmem:[#allocation2 + $0x1e8] sm:$0xff] %v3798_v0 }
  0xdb   : > { %418 = vst [vmem:[#allocation2 + $0x1f0] sm:$0xff] %v3798_v0  ;;  %419 = vst [vmem:[#allocation2 + $0x1f8] sm:$0xff] %v3798_v0 }
  0xdc PF: > { %v3219_v1 = vld [vmem:[%s4155_s21 + $0x4] ss:$8 sps:$4 sm:$0xff]   ;;  %v3221_v2 = vld [vmem:[%s4155_s21] ss:$8 sps:$4 sm:$0xff]   ;;  %v3222_v3 = vld [vmem:[%s4155_s21 + $0x14] ss:$8 sps:$4 sm:$0xff]  }
  0xdd   : > { %3064 = vmatprep.subr.bf16.mxu1 %v3219_v1  ;;  %804 = vmatprep.subr.bf16.mxu0 %v3219_v1  ;;  %v3224_v4 = vld [vmem:[%s4155_s21 + $0x10] ss:$8 sps:$4 sm:$0xff]   ;;  %v3225_v5 = vld [vmem:[%s4155_s21 + $0x24] ss:$8 sps:$4 sm:$0xff]   ;;  %v3227_v6 = vld [vmem:[%s4155_s21 + $0x20] ss:$8 sps:$4 sm:$0xff]  }
  0xde   : > { %3080 = vmatpush1.bf16.msra.mxu1 %v3221_v2  ;;  %805 = vmatpush1.bf16.msra.mxu0 %v3221_v2  ;;  %v3228_v7 = vld [vmem:[%s4155_s21 + $0x34] ss:$8 sps:$4 sm:$0xff]   ;;  %v3230_v8 = vld [vmem:[%s4155_s21 + $0x30] ss:$8 sps:$4 sm:$0xff]   ;;  %v3231_v9 = vld [vmem:[%s4155_s21 + $0x44] ss:$8 sps:$4 sm:$0xff]  }
  0xdf   : > { %3065 = vmatprep.subr.bf16.mxu1 %v3222_v3  ;;  %806 = vmatprep.subr.bf16.mxu0 %v3222_v3  ;;  %v3233_v10 = vld [vmem:[%s4155_s21 + $0x40] ss:$8 sps:$4 sm:$0xff]   ;;  %v3234_v11 = vld [vmem:[%s4155_s21 + $0x54] ss:$8 sps:$4 sm:$0xff]   ;;  %v3236_v12 = vld [vmem:[%s4155_s21 + $0x50] ss:$8 sps:$4 sm:$0xff]  }
  0xe0   : > { %v3237_v13 = vld [vmem:[%s4155_s21 + $0x64] ss:$8 sps:$4 sm:$0xff]   ;;  %v3239_v15 = vld [vmem:[%s4155_s21 + $0x60] ss:$8 sps:$4 sm:$0xff]   ;;  %v3240_v16 = vld [vmem:[%s4155_s21 + $0x74] ss:$8 sps:$4 sm:$0xff]  }
  0xe1   : > { %v4250_v14 = vld [vmem:[%s4147_s9 + $0x84] ss:$8 sps:$4 sm:$0xff]   ;;  %v3242_v17 = vld [vmem:[%s4155_s21 + $0x70] ss:$8 sps:$4 sm:$0xff]   ;;  %v3245_v19 = vld [vmem:[%s4155_s21 + $0x80] ss:$8 sps:$4 sm:$0xff]  }
  0xe2   : > { %3081 = vmatpush1.bf16.msra.mxu1 %v3224_v4  ;;  %807 = vmatpush1.bf16.msra.mxu0 %v3224_v4  ;;  %v3243_v18 = vld [vmem:[%s4155_s21 + $0x84] ss:$8 sps:$4 sm:$0xff]   ;;  %v3246_v20 = vld [vmem:[%s4155_s21 + $0x94] ss:$8 sps:$4 sm:$0xff]   ;;  %v3248_v21 = vld [vmem:[%s4155_s21 + $0x90] ss:$8 sps:$4 sm:$0xff]  }
  0xe3   : > { %3066 = vmatprep.subr.bf16.mxu1 %v3225_v5  ;;  %808 = vmatprep.subr.bf16.mxu0 %v3225_v5  ;;  %v3249_v22 = vld [vmem:[%s4155_s21 + $0xa4] ss:$8 sps:$4 sm:$0xff]   ;;  %v3251_v24 = vld [vmem:[%s4155_s21 + $0xa0] ss:$8 sps:$4 sm:$0xff]   ;;  %v3252_v25 = vld [vmem:[%s4155_s21 + $0xb4] ss:$8 sps:$4 sm:$0xff]  }
  0xe4   : > { %916 = vmatprep.mubr.bf16.mxu1 %v4250_v14  ;;  %v4262_v23 = vld [vmem:[%s4147_s9 + $0x4] ss:$8 sps:$4 sm:$0xff]   ;;  %v3254_v26 = vld [vmem:[%s4155_s21 + $0xb0] ss:$8 sps:$4 sm:$0xff]   ;;  %v3257_v28 = vld [vmem:[%s4155_s21 + $0xc0] ss:$8 sps:$4 sm:$0xff]  }
  0xe5   : > { %836 = vmatprep.mubr.bf16.mxu0 %v4262_v23  ;;  %v3255_v27 = vld [vmem:[%s4155_s21 + $0xc4] ss:$8 sps:$4 sm:$0xff]   ;;  %v3258_v29 = vld [vmem:[%s4155_s21 + $0xd4] ss:$8 sps:$4 sm:$0xff]   ;;  %v3260_v30 = vld [vmem:[%s4155_s21 + $0xd0] ss:$8 sps:$4 sm:$0xff]  }
  0xe6   : > { %3082 = vmatpush1.bf16.msra.mxu1 %v3227_v6  ;;  %809 = vmatpush1.bf16.msra.mxu0 %v3227_v6  ;;  %v3261_v31 = vld [vmem:[%s4155_s21 + $0xe4] ss:$8 sps:$4 sm:$0xff]   ;;  %v3263_v32 = vld [vmem:[%s4155_s21 + $0xe0] ss:$8 sps:$4 sm:$0xff]   ;;  %v3264_v33 = vld [vmem:[%s4155_s21 + $0xf4] ss:$8 sps:$4 sm:$0xff]  }
  0xe7   : > { %3067 = vmatprep.subr.bf16.mxu1 %v3228_v7  ;;  %810 = vmatprep.subr.bf16.mxu0 %v3228_v7  ;;  %v3266_v34 = vld [vmem:[%s4155_s21 + $0xf0] ss:$8 sps:$4 sm:$0xff]   ;;  %v4277_v35 = vld [vmem:[%s4147_s9 + $0x80] ss:$8 sps:$4 sm:$0xff]   ;;  %v3272_v36 = vld [vmem:[%s4161_s10 + $0x4] ss:$8 sps:$4 sm:$0xff]  }
  0xe8   : > { %v3270_v37 = vld [vmem:[%s4161_s10] ss:$8 sps:$4 sm:$0xff]   ;;  %v3275_v38 = vld [vmem:[%s4161_s10 + $0x14] ss:$8 sps:$4 sm:$0xff]   ;;  %v3273_v42 = vld [vmem:[%s4161_s10 + $0x10] ss:$8 sps:$4 sm:$0xff]  }
  0xe9   : > { %v4283_v39 = vld [vmem:[%s4147_s9] ss:$8 sps:$4 sm:$0xff]   ;;  %v4286_v40 = vld [vmem:[%s4147_s9 + $0x94] ss:$8 sps:$4 sm:$0xff]   ;;  %v3281_v43 = vld [vmem:[%s4161_s10 + $0x24] ss:$8 sps:$4 sm:$0xff]  }
  0xea   : > { %3083 = vmatpush1.bf16.msra.mxu1 %v3230_v8  ;;  %811 = vmatpush1.bf16.msra.mxu0 %v3230_v8  ;;  %v4289_v41 = vld [vmem:[%s4147_s9 + $0x14] ss:$8 sps:$4 sm:$0xff]   ;;  %v4297_v44 = vld [vmem:[%s4147_s9 + $0x90] ss:$8 sps:$4 sm:$0xff]   ;;  %v3279_v46 = vld [vmem:[%s4161_s10 + $0x20] ss:$8 sps:$4 sm:$0xff]  }
  0xeb   : > { %3068 = vmatprep.subr.bf16.mxu1 %v3231_v9  ;;  %812 = vmatprep.subr.bf16.mxu0 %v3231_v9  ;;  %v4301_v45 = vld [vmem:[%s4147_s9 + $0x10] ss:$8 sps:$4 sm:$0xff]   ;;  %v4305_v47 = vld [vmem:[%s4147_s9 + $0xa4] ss:$8 sps:$4 sm:$0xff]   ;;  %v3284_v48 = vld [vmem:[%s4161_s10 + $0x34] ss:$8 sps:$4 sm:$0xff]  }
  0xec   : > { %v4309_v49 = vld [vmem:[%s4147_s9 + $0x24] ss:$8 sps:$4 sm:$0xff]   ;;  %v3282_v50 = vld [vmem:[%s4161_s10 + $0x30] ss:$8 sps:$4 sm:$0xff]   ;;  %v4318_v52 = vld [vmem:[%s4147_s9 + $0xa0] ss:$8 sps:$4 sm:$0xff]  }
  0xed   : > { %v3290_v51 = vld [vmem:[%s4161_s10 + $0x44] ss:$8 sps:$4 sm:$0xff]   ;;  %v4321_v53 = vld [vmem:[%s4147_s9 + $0x20] ss:$8 sps:$4 sm:$0xff]   ;;  %v4325_v55 = vld [vmem:[%s4147_s9 + $0xb4] ss:$8 sps:$4 sm:$0xff]  }
  0xee   : > { %3084 = vmatpush1.bf16.msra.mxu1 %v3233_v10  ;;  %813 = vmatpush1.bf16.msra.mxu0 %v3233_v10  ;;  %v3288_v54 = vld [vmem:[%s4161_s10 + $0x40] ss:$8 sps:$4 sm:$0xff]   ;;  %v3293_v56 = vld [vmem:[%s4161_s10 + $0x54] ss:$8 sps:$4 sm:$0xff]   ;;  %v3291_v58 = vld [vmem:[%s4161_s10 + $0x50] ss:$8 sps:$4 sm:$0xff]  }
  0xef   : > { %3069 = vmatprep.subr.bf16.mxu1 %v3234_v11  ;;  %814 = vmatprep.subr.bf16.mxu0 %v3234_v11  ;;  %v4329_v57 = vld [vmem:[%s4147_s9 + $0x34] ss:$8 sps:$4 sm:$0xff]   ;;  %v3299_v59 = vld [vmem:[%s4161_s10 + $0x64] ss:$8 sps:$4 sm:$0xff]   ;;  %v4338_v60 = vld [vmem:[%s4147_s9 + $0xb0] ss:$8 sps:$4 sm:$0xff]  }
  0xf0   : > { %v4341_v61 = vld [vmem:[%s4147_s9 + $0x30] ss:$8 sps:$4 sm:$0xff]   ;;  %v3297_v62 = vld [vmem:[%s4161_s10 + $0x60] ss:$8 sps:$4 sm:$0xff]   ;;  %v4345_v63 = vld [vmem:[%s4147_s9 + $0xc4] ss:$8 sps:$4 sm:$0xff]  }
  0xf1   : > { %v3305_v0 = vld [vmem:[%s4161_s10 + $0x74] ss:$8 sps:$4 sm:$0xff]   ;;  %v4349_v1 = vld [vmem:[%s4147_s9 + $0x44] ss:$8 sps:$4 sm:$0xff]   ;;  %v3303_v2 = vld [vmem:[%s4161_s10 + $0x70] ss:$8 sps:$4 sm:$0xff]  }
  0xf2   : > { %3085 = vmatpush1.bf16.msra.mxu1 %v3236_v12  ;;  %815 = vmatpush1.bf16.msra.mxu0 %v3236_v12  ;;  %v3311_v3 = vld [vmem:[%s4161_s10 + $0x84] ss:$8 sps:$4 sm:$0xff]   ;;  %v4358_v4 = vld [vmem:[%s4147_s9 + $0xc0] ss:$8 sps:$4 sm:$0xff]   ;;  %v4365_v7 = vld [vmem:[%s4147_s9 + $0xd4] ss:$8 sps:$4 sm:$0xff]  }
  0xf3   : > { %3070 = vmatprep.subr.bf16.mxu1 %v3237_v13  ;;  %816 = vmatprep.subr.bf16.mxu0 %v3237_v13  ;;  %v4361_v5 = vld [vmem:[%s4147_s9 + $0x40] ss:$8 sps:$4 sm:$0xff]   ;;  %v3317_v8 = vld [vmem:[%s4161_s10 + $0x94] ss:$8 sps:$4 sm:$0xff]   ;;  %v3315_v10 = vld [vmem:[%s4161_s10 + $0x90] ss:$8 sps:$4 sm:$0xff]  }
  0xf4   : > { %v3309_v6 = vld [vmem:[%s4161_s10 + $0x80] ss:$8 sps:$4 sm:$0xff]   ;;  %v4369_v9 = vld [vmem:[%s4147_s9 + $0x54] ss:$8 sps:$4 sm:$0xff]   ;;  %v3323_v11 = vld [vmem:[%s4161_s10 + $0xa4] ss:$8 sps:$4 sm:$0xff]  }
  0xf5   : > { %v4378_v12 = vld [vmem:[%s4147_s9 + $0xd0] ss:$8 sps:$4 sm:$0xff]   ;;  %s4979_s11 = sld [smem:[#allocation18_spill]] }
  0xf6   : > { %3086 = vmatpush1.bf16.msra.mxu1 %v3239_v15  ;;  %817 = vmatpush1.bf16.msra.mxu0 %v3239_v15  ;;  %v4381_v13 = vld [vmem:[%s4147_s9 + $0x50] ss:$8 sps:$4 sm:$0xff]   ;;  %v3321_v15 = vld [vmem:[%s4161_s10 + $0xa0] ss:$8 sps:$4 sm:$0xff]  }
  0xf7   : > { %3071 = vmatprep.subr.bf16.mxu1 %v3240_v16  ;;  %818 = vmatprep.subr.bf16.mxu0 %v3240_v16  ;;  %v4385_v16 = vld [vmem:[%s4147_s9 + $0xe4] ss:$8 sps:$4 sm:$0xff]  }
  0xfa   : > { %3087 = vmatpush1.bf16.msra.mxu1 %v3242_v17  ;;  %819 = vmatpush1.bf16.msra.mxu0 %v3242_v17  ;;  %v3329_v17 = vld [vmem:[%s4161_s10 + $0xb4] ss:$8 sps:$4 sm:$0xff]  }
  0xfb   : > { %3072 = vmatprep.subr.bf16.mxu1 %v3243_v18  ;;  %820 = vmatprep.subr.bf16.mxu0 %v3243_v18  ;;  %v4389_v18 = vld [vmem:[%s4147_s9 + $0x64] ss:$8 sps:$4 sm:$0xff]   ;;  %p2985_p5 = scmp.ne.s32.totalorder %s4979_s11, 1 }
  0xfe   : > { %3088 = vmatpush1.bf16.msra.mxu1 %v3245_v19  ;;  %821 = vmatpush1.bf16.msra.mxu0 %v3245_v19  ;;  %v3327_v19 = vld [vmem:[%s4161_s10 + $0xb0] ss:$8 sps:$4 sm:$0xff]  }
  0xff   : > { %3073 = vmatprep.subr.bf16.mxu1 %v3246_v20  ;;  %822 = vmatprep.subr.bf16.mxu0 %v3246_v20  ;;  %v3335_v20 = vld [vmem:[%s4161_s10 + $0xc4] ss:$8 sps:$4 sm:$0xff]  }
 0x102   : > { %3089 = vmatpush1.bf16.msra.mxu1 %v3248_v21  ;;  %823 = vmatpush1.bf16.msra.mxu0 %v3248_v21  ;;  %v4398_v21 = vld [vmem:[%s4147_s9 + $0xe0] ss:$8 sps:$4 sm:$0xff]  }
 0x103   : > { %3074 = vmatprep.subr.bf16.mxu1 %v3249_v22  ;;  %824 = vmatprep.subr.bf16.mxu0 %v3249_v22  ;;  %v3359_v22 = vld [vmem:[%s4147_s9 + $0x60] ss:$8 sps:$4 sm:$0xff]  }
 0x106   : > { %3090 = vmatpush1.bf16.msra.mxu1 %v3251_v24  ;;  %825 = vmatpush1.bf16.msra.mxu0 %v3251_v24  ;;  %v3333_v24 = vld [vmem:[%s4161_s10 + $0xc0] ss:$8 sps:$4 sm:$0xff]  }
 0x107   : > { %3075 = vmatprep.subr.bf16.mxu1 %v3252_v25  ;;  %826 = vmatprep.subr.bf16.mxu0 %v3252_v25  ;;  %v4403_v25 = vld [vmem:[%s4147_s9 + $0xf4] ss:$8 sps:$4 sm:$0xff]  }
 0x10a   : > { %3091 = vmatpush1.bf16.msra.mxu1 %v3254_v26  ;;  %827 = vmatpush1.bf16.msra.mxu0 %v3254_v26  ;;  %v3341_v26 = vld [vmem:[%s4161_s10 + $0xd4] ss:$8 sps:$4 sm:$0xff]  }
 0x10b   : > { %3076 = vmatprep.subr.bf16.mxu1 %v3255_v27  ;;  %828 = vmatprep.subr.bf16.mxu0 %v3255_v27  ;;  %v3360_v27 = vld [vmem:[%s4147_s9 + $0x74] ss:$8 sps:$4 sm:$0xff]  }
 0x10e   : > { %3092 = vmatpush1.bf16.msra.mxu1 %v3257_v28  ;;  %829 = vmatpush1.bf16.msra.mxu0 %v3257_v28  ;;  %v3339_v28 = vld [vmem:[%s4161_s10 + $0xd0] ss:$8 sps:$4 sm:$0xff]  }
 0x10f   : > { %3077 = vmatprep.subr.bf16.mxu1 %v3258_v29  ;;  %830 = vmatprep.subr.bf16.mxu0 %v3258_v29  ;;  %v3347_v29 = vld [vmem:[%s4161_s10 + $0xe4] ss:$8 sps:$4 sm:$0xff]  }
 0x112   : > { %3093 = vmatpush1.bf16.msra.mxu1 %v3260_v30  ;;  %831 = vmatpush1.bf16.msra.mxu0 %v3260_v30  ;;  %v4412_v30 = vld [vmem:[%s4147_s9 + $0xf0] ss:$8 sps:$4 sm:$0xff]  }
 0x113   : > { %3078 = vmatprep.subr.bf16.mxu1 %v3261_v31  ;;  %832 = vmatprep.subr.bf16.mxu0 %v3261_v31  ;;  %v3362_v31 = vld [vmem:[%s4147_s9 + $0x70] ss:$8 sps:$4 sm:$0xff]  }
 0x116   : > { %3094 = vmatpush1.bf16.msra.mxu1 %v3263_v32  ;;  %833 = vmatpush1.bf16.msra.mxu0 %v3263_v32  ;;  %v3345_v32 = vld [vmem:[%s4161_s10 + $0xe0] ss:$8 sps:$4 sm:$0xff]  }
 0x117   : > { %3079 = vmatprep.subr.bf16.mxu1 %v3264_v33  ;;  %834 = vmatprep.subr.bf16.mxu0 %v3264_v33  ;;  %v3353_v33 = vld [vmem:[%s4161_s10 + $0xf4] ss:$8 sps:$4 sm:$0xff]  }
 0x11a   : > { %3095 = vmatpush1.bf16.msra.mxu1 %v3266_v34  ;;  %835 = vmatpush1.bf16.msra.mxu0 %v3266_v34  ;;  %v3351_v34 = vld [vmem:[%s4161_s10 + $0xf0] ss:$8 sps:$4 sm:$0xff]  }
 0x11b   : > { %1189 = vmatprep.subr.bf16.mxu1 %v3272_v36  ;;  %v3363_v36 = vld [vmem:[%s4163_s27] ss:$8 sps:$4 sm:$0xff]  }
 0x11d   : > { %917 = vmatmul.mubr.bf16.vlgmr.msra.gmra.mrb[0].mxu1 %v4277_v35  ;;  %837 = vmatmul.mubr.bf16.vlgmr.msra.gmra.mrb[0].mxu0 %v4283_v39 }
 0x11e   : > { %1190 = vmatpush1.bf16.msra.mxu1 %v3270_v37  ;;  %926 = vmatprep.mubr.bf16.mxu1 %v4286_v40  ;;  %v3368_v37 = vld [vmem:[%s4163_s27 + $0x14] ss:$8 sps:$4 sm:$0xff]  }
 0x11f   : > { %1191 = vmatprep.subr.bf16.mxu1 %v3275_v38  ;;  %846 = vmatprep.mubr.bf16.mxu0 %v4289_v41  ;;  %v3366_v38 = vld [vmem:[%s4163_s27 + $0x10] ss:$8 sps:$4 sm:$0xff]  }
 0x122   : > { %1192 = vmatpush1.bf16.msra.mxu1 %v3273_v42  ;;  %v3374_v42 = vld [vmem:[%s4163_s27 + $0x34] ss:$8 sps:$4 sm:$0xff]  }
 0x123   : > { %1193 = vmatprep.subr.bf16.mxu1 %v3281_v43  ;;  %v3372_v43 = vld [vmem:[%s4163_s27 + $0x30] ss:$8 sps:$4 sm:$0xff]  }
 0x125   : > { %927 = vmatmul.mubr.bf16.gmra.mrb[4].mxu1 %v4297_v44  ;;  %847 = vmatmul.mubr.bf16.gmra.mrb[4].mxu0 %v4301_v45 }
 0x126   : > { %1194 = vmatpush1.bf16.msra.mxu1 %v3279_v46  ;;  %936 = vmatprep.mubr.bf16.mxu1 %v4305_v47  ;;  %v3375_v46 = vld [vmem:[%s4163_s27 + $0x40] ss:$8 sps:$4 sm:$0xff]  }
 0x127   : > { %1195 = vmatprep.subr.bf16.mxu1 %v3284_v48  ;;  %856 = vmatprep.mubr.bf16.mxu0 %v4309_v49  ;;  %v3380_v48 = vld [vmem:[%s4163_s27 + $0x54] ss:$8 sps:$4 sm:$0xff]  }
 0x12a   : > { %1196 = vmatpush1.bf16.msra.mxu1 %v3282_v50  ;;  %v3383_v50 = vld [vmem:[%s4163_s27 + $0x64] ss:$8 sps:$4 sm:$0xff]  }
 0x12b   : > { %1197 = vmatprep.subr.bf16.mxu1 %v3290_v51  ;;  %v3381_v51 = vld [vmem:[%s4163_s27 + $0x60] ss:$8 sps:$4 sm:$0xff]  }
 0x12d   : > { %937 = vmatmul.mubr.bf16.gmra.mrb[8].mxu1 %v4318_v52  ;;  %857 = vmatmul.mubr.bf16.gmra.mrb[8].mxu0 %v4321_v53 }
 0x12e   : > { %1198 = vmatpush1.bf16.msra.mxu1 %v3288_v54  ;;  %946 = vmatprep.mubr.bf16.mxu1 %v4325_v55  ;;  %v3384_v54 = vld [vmem:[%s4163_s27 + $0x70] ss:$8 sps:$4 sm:$0xff]  }
 0x12f   : > { %1199 = vmatprep.subr.bf16.mxu1 %v3293_v56  ;;  %866 = vmatprep.mubr.bf16.mxu0 %v4329_v57  ;;  %v3389_v56 = vld [vmem:[%s4163_s27 + $0x84] ss:$8 sps:$4 sm:$0xff]  }
 0x132   : > { %1200 = vmatpush1.bf16.msra.mxu1 %v3291_v58  ;;  %v3392_v58 = vld [vmem:[%s4163_s27 + $0x94] ss:$8 sps:$4 sm:$0xff]  }
 0x133   : > { %1201 = vmatprep.subr.bf16.mxu1 %v3299_v59  ;;  %v3390_v59 = vld [vmem:[%s4163_s27 + $0x90] ss:$8 sps:$4 sm:$0xff]  }
 0x135   : > { %947 = vmatmul.mubr.bf16.gmra.mrb[12].mxu1 %v4338_v60  ;;  %867 = vmatmul.mubr.bf16.gmra.mrb[12].mxu0 %v4341_v61 }
 0x136   : > { %1202 = vmatpush1.bf16.msra.mxu1 %v3297_v62  ;;  %956 = vmatprep.mubr.bf16.mxu1 %v4345_v63  ;;  %v3398_v62 = vld [vmem:[%s4163_s27 + $0xb4] ss:$8 sps:$4 sm:$0xff]  }
 0x137   : > { %1203 = vmatprep.subr.bf16.mxu1 %v3305_v0  ;;  %876 = vmatprep.mubr.bf16.mxu0 %v4349_v1  ;;  %v3396_v0 = vld [vmem:[%s4163_s27 + $0xb0] ss:$8 sps:$4 sm:$0xff]  }
 0x13a   : > { %1204 = vmatpush1.bf16.msra.mxu1 %v3303_v2  ;;  %v3402_v2 = vld [vmem:[%s4163_s27 + $0xd0] ss:$8 sps:$4 sm:$0xff]  }
 0x13b   : > { %1205 = vmatprep.subr.bf16.mxu1 %v3311_v3  ;;  %v3405_v3 = vld [vmem:[%s4163_s27 + $0xe0] ss:$8 sps:$4 sm:$0xff]  }
 0x13d   : > { %957 = vmatmul.mubr.bf16.gmra.mrb[16].mxu1 %v4358_v4  ;;  %877 = vmatmul.mubr.bf16.gmra.mrb[16].mxu0 %v4361_v5 }
 0x13e   : > { %1206 = vmatpush1.bf16.msra.mxu1 %v3309_v6  ;;  %966 = vmatprep.mubr.bf16.mxu1 %v4365_v7 }
 0x13f   : > { %1207 = vmatprep.subr.bf16.mxu1 %v3317_v8  ;;  %886 = vmatprep.mubr.bf16.mxu0 %v4369_v9 }
 0x142   : > { %1208 = vmatpush1.bf16.msra.mxu1 %v3315_v10 }
 0x143   : > { %1209 = vmatprep.subr.bf16.mxu1 %v3323_v11 }
 0x145   : > { %967 = vmatmul.mubr.bf16.gmra.mrb[20].mxu1 %v4378_v12  ;;  %887 = vmatmul.mubr.bf16.gmra.mrb[20].mxu0 %v4381_v13 }
 0x146   : > { %1210 = vmatpush1.bf16.msra.mxu1 %v3321_v15  ;;  %976 = vmatprep.mubr.bf16.mxu1 %v4385_v16 }
 0x147   : > { %1211 = vmatprep.subr.bf16.mxu1 %v3329_v17  ;;  %896 = vmatprep.mubr.bf16.mxu0 %v4389_v18 }
 0x14a   : > { %1212 = vmatpush1.bf16.msra.mxu1 %v3327_v19 }
 0x14b   : > { %1213 = vmatprep.subr.bf16.mxu1 %v3335_v20 }
 0x14d   : > { %977 = vmatmul.mubr.bf16.gmra.mrb[24].mxu1 %v4398_v21  ;;  %897 = vmatmul.mubr.bf16.gmra.mrb[24].mxu0 %v3359_v22 }
 0x14e   : > { %1214 = vmatpush1.bf16.msra.mxu1 %v3333_v24  ;;  %986 = vmatprep.mubr.bf16.mxu1 %v4403_v25 }
 0x14f   : > { %1215 = vmatprep.subr.bf16.mxu1 %v3341_v26  ;;  %906 = vmatprep.mubr.bf16.mxu0 %v3360_v27 }
 0x152   : > { %1216 = vmatpush1.bf16.msra.mxu1 %v3339_v28 }
 0x153   : > { %1217 = vmatprep.subr.bf16.mxu1 %v3347_v29 }
 0x155   : > { %987 = vmatmul.mubr.bf16.gmra.mrb[28].mxu1 %v4412_v30  ;;  %907 = vmatmul.mubr.bf16.gmra.mrb[28].mxu0 %v3362_v31 }
 0x156   : > { %1218 = vmatpush1.bf16.msra.mxu1 %v3345_v32  ;;  %1221 = vmatprep.mubr.bf16.mxu1 %v4262_v23  ;;  %v3365_v23 = vld [vmem:[%s4163_s27 + $0x4] ss:$8 sps:$4 sm:$0xff]  }
 0x157   : > { %1219 = vmatprep.subr.bf16.mxu1 %v3353_v33  ;;  %2054 = vmatprep.subr.bf16.mxu0 %v3365_v23 }
 0x158   : > { %2055 = vmatpush1.bf16.msra.mxu0 %v3363_v36 }
 0x159   : > { %2056 = vmatprep.subr.bf16.mxu0 %v3368_v37 }
 0x15a   : > { %1220 = vmatpush1.bf16.msra.mxu1 %v3351_v34 }
 0x15c   : > { %2057 = vmatpush1.bf16.msra.mxu0 %v3366_v38 }
 0x15d   : > { %1222 = vmatmul.mubr.bf16.vlgmr.msra.gmra.mrb[32].mxu1 %v4283_v39  ;;  %v3371_v39 = vld [vmem:[%s4163_s27 + $0x24] ss:$8 sps:$4 sm:$0xff]  }
 0x15e   : > { %1231 = vmatprep.mubr.bf16.mxu1 %v4289_v41  ;;  %v3369_v41 = vld [vmem:[%s4163_s27 + $0x20] ss:$8 sps:$4 sm:$0xff]   ;;  %2058 = vmatprep.subr.bf16.mxu0 %v3371_v39 }
 0x160   : > { %2059 = vmatpush1.bf16.msra.mxu0 %v3369_v41 }
 0x161   : > { %2060 = vmatprep.subr.bf16.mxu0 %v3374_v42 }
 0x164   : > { %2061 = vmatpush1.bf16.msra.mxu0 %v3372_v43 }
 0x165   : > { %1232 = vmatmul.mubr.bf16.gmra.mrb[36].mxu1 %v4301_v45  ;;  %v3377_v45 = vld [vmem:[%s4163_s27 + $0x44] ss:$8 sps:$4 sm:$0xff]  }
 0x166   : > { %1241 = vmatprep.mubr.bf16.mxu1 %v4309_v49  ;;  %2062 = vmatprep.subr.bf16.mxu0 %v3377_v45  ;;  %v3378_v49 = vld [vmem:[%s4163_s27 + $0x50] ss:$8 sps:$4 sm:$0xff]  }
 0x168   : > { %2063 = vmatpush1.bf16.msra.mxu0 %v3375_v46 }
 0x169   : > { %2064 = vmatprep.subr.bf16.mxu0 %v3380_v48 }
 0x16c   : > { %2065 = vmatpush1.bf16.msra.mxu0 %v3378_v49 }
 0x16d   : > { %1242 = vmatmul.mubr.bf16.gmra.mrb[40].mxu1 %v4321_v53  ;;  %2066 = vmatprep.subr.bf16.mxu0 %v3383_v50  ;;  %v3386_v53 = vld [vmem:[%s4163_s27 + $0x74] ss:$8 sps:$4 sm:$0xff]  }
 0x16e   : > { %1251 = vmatprep.mubr.bf16.mxu1 %v4329_v57  ;;  %v3387_v57 = vld [vmem:[%s4163_s27 + $0x80] ss:$8 sps:$4 sm:$0xff]  }
 0x170   : > { %2067 = vmatpush1.bf16.msra.mxu0 %v3381_v51 }
 0x171   : > { %2068 = vmatprep.subr.bf16.mxu0 %v3386_v53 }
 0x174   : > { %2069 = vmatpush1.bf16.msra.mxu0 %v3384_v54 }
 0x175   : > { %1252 = vmatmul.mubr.bf16.gmra.mrb[44].mxu1 %v4341_v61  ;;  %2070 = vmatprep.subr.bf16.mxu0 %v3389_v56  ;;  %v3395_v61 = vld [vmem:[%s4163_s27 + $0xa4] ss:$8 sps:$4 sm:$0xff]  }
 0x176   : > { %1261 = vmatprep.mubr.bf16.mxu1 %v4349_v1  ;;  %v3404_v1 = vld [vmem:[%s4163_s27 + $0xd4] ss:$8 sps:$4 sm:$0xff]  }
 0x178   : > { %2071 = vmatpush1.bf16.msra.mxu0 %v3387_v57 }
 0x179   : > { %2072 = vmatprep.subr.bf16.mxu0 %v3392_v58 }
 0x17c   : > { %2073 = vmatpush1.bf16.msra.mxu0 %v3390_v59 }
 0x17d   : > { %1262 = vmatmul.mubr.bf16.gmra.mrb[48].mxu1 %v4361_v5  ;;  %2074 = vmatprep.subr.bf16.mxu0 %v3395_v61  ;;  %v3408_v5 = vld [vmem:[%s4163_s27 + $0xf0] ss:$8 sps:$4 sm:$0xff]  }
 0x17e   : > { %1271 = vmatprep.mubr.bf16.mxu1 %v4369_v9 }
 0x185   : > { %1272 = vmatmul.mubr.bf16.gmra.mrb[52].mxu1 %v4381_v13 }
 0x186   : > { %1281 = vmatprep.mubr.bf16.mxu1 %v4389_v18 }
 0x18d   : > { %1282 = vmatmul.mubr.bf16.gmra.mrb[56].mxu1 %v3359_v22 }
 0x18e   : > { %1291 = vmatprep.mubr.bf16.mxu1 %v3360_v27 }
 0x195   : > { %1292 = vmatmul.mubr.bf16.gmra.mrb[60].mxu1 %v3362_v31 }
 0x196   : > { %1301 = vmatprep.mubr.bf16.mxu1 %v4250_v14  ;;  %v3393_v14 = vld [vmem:[%s4163_s27 + $0xa0] ss:$8 sps:$4 sm:$0xff]  }
 0x197   : > { %2075 = vmatpush1.bf16.msra.mxu0 %v3393_v14 }
 0x198   : > { %2076 = vmatprep.subr.bf16.mxu0 %v3398_v62 }
 0x19b   : > { %2077 = vmatpush1.bf16.msra.mxu0 %v3396_v0 }
 0x19d   : > { %1302 = vmatmul.mubr.bf16.gmra.mrb[64].mxu1 %v4277_v35  ;;  %v3401_v35 = vld [vmem:[%s4163_s27 + $0xc4] ss:$8 sps:$4 sm:$0xff]  }
 0x19e   : > { %1311 = vmatprep.mubr.bf16.mxu1 %v4286_v40  ;;  %v3399_v40 = vld [vmem:[%s4163_s27 + $0xc0] ss:$8 sps:$4 sm:$0xff]   ;;  %2078 = vmatprep.subr.bf16.mxu0 %v3401_v35 }
 0x19f   : > { %2079 = vmatpush1.bf16.msra.mxu0 %v3399_v40 }
 0x1a0   : > { %2080 = vmatprep.subr.bf16.mxu0 %v3404_v1 }
 0x1a3   : > { %2081 = vmatpush1.bf16.msra.mxu0 %v3402_v2 }
 0x1a5   : > { %1312 = vmatmul.mubr.bf16.gmra.mrb[68].mxu1 %v4297_v44  ;;  %v3407_v44 = vld [vmem:[%s4163_s27 + $0xe4] ss:$8 sps:$4 sm:$0xff]  }
 0x1a6   : > { %1321 = vmatprep.mubr.bf16.mxu1 %v4305_v47  ;;  %2082 = vmatprep.subr.bf16.mxu0 %v3407_v44  ;;  %v3410_v47 = vld [vmem:[%s4163_s27 + $0xf4] ss:$8 sps:$4 sm:$0xff]  }
 0x1a7   : > { %2083 = vmatpush1.bf16.msra.mxu0 %v3405_v3 }
 0x1a8   : > { %2084 = vmatprep.subr.bf16.mxu0 %v3410_v47 }
 0x1ab   : > { %2085 = vmatpush1.bf16.msra.mxu0 %v3408_v5 }
 0x1ad   : > { %1322 = vmatmul.mubr.bf16.gmra.mrb[72].mxu1 %v4318_v52 }
 0x1ae   : > { %1331 = vmatprep.mubr.bf16.mxu1 %v4325_v55 }
 0x1b5   : > { %1332 = vmatmul.mubr.bf16.gmra.mrb[76].mxu1 %v4338_v60 }
 0x1b6   : > { %1341 = vmatprep.mubr.bf16.mxu1 %v4345_v63 }
 0x1bd   : > { %1342 = vmatmul.mubr.bf16.gmra.mrb[80].mxu1 %v4358_v4 }
 0x1be   : > { %1351 = vmatprep.mubr.bf16.mxu1 %v4365_v7 }
 0x1c5   : > { %1352 = vmatmul.mubr.bf16.gmra.mrb[84].mxu1 %v4378_v12 }
 0x1c6   : > { %1361 = vmatprep.mubr.bf16.mxu1 %v4385_v16 }
 0x1cd   : > { %1362 = vmatmul.mubr.bf16.gmra.mrb[88].mxu1 %v4398_v21 }
 0x1ce   : > { %1371 = vmatprep.mubr.bf16.mxu1 %v4403_v25 }
 0x1d5   : > { %1372 = vmatmul.mubr.bf16.gmra.mrb[92].mxu1 %v4412_v30 }
 0x1f0   : > { %v4480_v52 = vpop.f32.mrb[0].mxu1  ;;  %v4482_v55 = vpop.f32.mrb[0].mxu0 }
 0x1f1   : > { %v4484_v60 = vpop.f32.mrb[1].mxu1  ;;  %v4486_v63 = vpop.f32.mrb[1].mxu0  ;;  %v1382_v45 = vmul.f32 0.5, %v4482_v55 }
 0x1f2   : > { %v4488_v4 = vpop.f32.mrb[2].mxu1  ;;  %v4490_v6 = vpop.f32.mrb[2].mxu0  ;;  %v1383_v46 = vmul.f32 0.5, %v4486_v63 }
 0x1f3   : > { %v4492_v7 = vpop.f32.mrb[3].mxu1  ;;  %v4494_v8 = vpop.f32.mrb[3].mxu0  ;;  %v1384_v48 = vmul.f32 0.5, %v4490_v6  ;;  %3411 = vtanh.f32 %v1382_v45 }
 0x1f4   : > { %v1385_v54 = vmul.f32 0.5, %v4494_v8  ;;  %3413 = vtanh.f32 %v1383_v46 }
 0x1f5   : > { %3415 = vtanh.f32 %v1384_v48 }
 0x1f6   : > { %3417 = vtanh.f32 %v1385_v54 }
 0x1f8   : > { %v4496_v9 = vpop.f32.mrb[4].mxu1  ;;  %v4498_v10 = vpop.f32.mrb[4].mxu0 }
 0x1f9   : > { %v4500_v11 = vpop.f32.mrb[5].mxu1  ;;  %v4502_v12 = vpop.f32.mrb[5].mxu0  ;;  %v1386_v61 = vmul.f32 0.5, %v4498_v10 }
 0x1fa   : > { %v4504_v13 = vpop.f32.mrb[6].mxu1  ;;  %v4506_v15 = vpop.f32.mrb[6].mxu0  ;;  %v1387_v14 = vmul.f32 0.5, %v4502_v12 }
 0x1fb   : > { %v4508_v16 = vpop.f32.mrb[7].mxu1  ;;  %v4510_v17 = vpop.f32.mrb[7].mxu0  ;;  %3419 = vtanh.f32 %v1386_v61  ;;  %v1388_v35 = vmul.f32 0.5, %v4506_v15 }
 0x1fc   : > { %4929 = vst [vmem:[#allocation26_spill] sm:$0xff] %v4508_v16  ;;  %v1389_v2 = vmul.f32 0.5, %v4510_v17  ;;  %3421 = vtanh.f32 %v1387_v14 }
 0x1fd   : > { %v3412_v45 = vpop.eup %3411  ;;  %3423 = vtanh.f32 %v1388_v35 }
 0x1fe   : > { %v3414_v46 = vpop.eup %3413  ;;  %3425 = vtanh.f32 %v1389_v2  ;;  %v1510_v61 = vadd.f32 1.0, %v3412_v45 }
 0x1ff   : > { %v3416_v48 = vpop.eup %3415 }
 0x200   : > { %v4512_v18 = vpop.f32.mrb[8].mxu1  ;;  %v4514_v19 = vpop.f32.mrb[8].mxu0 }
 0x201   : > { %4930 = vst [vmem:[#allocation27_spill] sm:$0xff] %v4512_v18  ;;  %v4516_v20 = vpop.f32.mrb[9].mxu1  ;;  %v4518_v21 = vpop.f32.mrb[9].mxu0  ;;  %v1390_v54 = vmul.f32 0.5, %v4514_v19 }
 0x202   : > { %4931 = vst [vmem:[#allocation28_spill] sm:$0xff] %v4516_v20  ;;  %v4520_v22 = vpop.f32.mrb[10].mxu1  ;;  %v4522_v24 = vpop.f32.mrb[10].mxu0 }
 0x203   : > { %4932 = vst [vmem:[#allocation29_spill] sm:$0xff] %v4520_v22  ;;  %v4524_v25 = vpop.f32.mrb[11].mxu1  ;;  %v4526_v26 = vpop.f32.mrb[11].mxu0  ;;  %3427 = vtanh.f32 %v1390_v54 }
 0x204   : > { %4933 = vst [vmem:[#allocation30_spill] sm:$0xff] %v4524_v25 }
 0x208   : > { %v4528_v27 = vpop.f32.mrb[12].mxu1  ;;  %v4530_v28 = vpop.f32.mrb[12].mxu0 }
 0x209   : > { %4934 = vst [vmem:[#allocation31_spill] sm:$0xff] %v4528_v27  ;;  %v4532_v29 = vpop.f32.mrb[13].mxu1  ;;  %v4534_v30 = vpop.f32.mrb[13].mxu0  ;;  %v1394_v54 = vmul.f32 0.5, %v4530_v28 }
 0x20a   : > { %4935 = vst [vmem:[#allocation32_spill] sm:$0xff] %v4532_v29  ;;  %v4536_v31 = vpop.f32.mrb[14].mxu1  ;;  %v4538_v32 = vpop.f32.mrb[14].mxu0 }
 0x20b   : > { %4936 = vst [vmem:[#allocation33_spill] sm:$0xff] %v4536_v31  ;;  %v4540_v33 = vpop.f32.mrb[15].mxu1  ;;  %v4542_v34 = vpop.f32.mrb[15].mxu0  ;;  %v1396_v27 = vmul.f32 0.5, %v4538_v32 }
 0x20c   : > { %4937 = vst [vmem:[#allocation34_spill] sm:$0xff] %v4540_v33 }
 0x210   : > { %v4544_v23 = vpop.f32.mrb[16].mxu1  ;;  %v4546_v36 = vpop.f32.mrb[16].mxu0 }
 0x211   : > { %4938 = vst [vmem:[#allocation35_spill] sm:$0xff] %v4544_v23  ;;  %v4548_v37 = vpop.f32.mrb[17].mxu1  ;;  %v4550_v38 = vpop.f32.mrb[17].mxu0 }
 0x212   : > { %4939 = vst [vmem:[#allocation36_spill] sm:$0xff] %v4548_v37  ;;  %v4552_v39 = vpop.f32.mrb[18].mxu1  ;;  %v4554_v41 = vpop.f32.mrb[18].mxu0 }
 0x213   : > { %4940 = vst [vmem:[#allocation37_spill] sm:$0xff] %v4552_v39  ;;  %v4556_v42 = vpop.f32.mrb[19].mxu1  ;;  %v4558_v43 = vpop.f32.mrb[19].mxu0 }
 0x214   : > { %4941 = vst [vmem:[#allocation38_spill] sm:$0xff] %v4556_v42 }
 0x218   : > { %v4563_v49 = vpop.f32.mrb[20].mxu1  ;;  %v4565_v50 = vpop.f32.mrb[20].mxu0 }
 0x219   : > { %4942 = vst [vmem:[#allocation39_spill] sm:$0xff] %v4563_v49  ;;  %v4567_v51 = vpop.f32.mrb[21].mxu1  ;;  %v4569_v53 = vpop.f32.mrb[21].mxu0 }
 0x21a   : > { %4943 = vst [vmem:[#allocation40_spill] sm:$0xff] %v4567_v51  ;;  %v4572_v56 = vpop.f32.mrb[22].mxu1  ;;  %v4574_v57 = vpop.f32.mrb[22].mxu0  ;;  %v1393_v51 = vmul.f32 0.5, %v4526_v26 }
 0x21b   : > { %4944 = vst [vmem:[#allocation41_spill] sm:$0xff] %v4572_v56  ;;  %v4576_v58 = vpop.f32.mrb[23].mxu1  ;;  %v4578_v59 = vpop.f32.mrb[23].mxu0 }
 0x21c   : > { %4945 = vst [vmem:[#allocation42_spill] sm:$0xff] %v4576_v58  ;;  %v1511_v58 = vadd.f32 1.0, %v3414_v46  ;;  %v1574_v46 = vmul.f32 0.5, %v1510_v61  ;;  %v1395_v61 = vmul.f32 0.5, %v4534_v30 }
 0x220   : > { %v4582_v62 = vpop.f32.mrb[24].mxu1  ;;  %v4584_v0 = vpop.f32.mrb[24].mxu0 }
 0x221   : > { %4946 = vst [vmem:[#allocation43_spill] sm:$0xff] %v4582_v62  ;;  %v4587_v40 = vpop.f32.mrb[25].mxu1  ;;  %v4589_v1 = vpop.f32.mrb[25].mxu0 }
 0x222   : > { %4947 = vst [vmem:[#allocation44_spill] sm:$0xff] %v4587_v40  ;;  %v4592_v44 = vpop.f32.mrb[26].mxu1  ;;  %v4594_v3 = vpop.f32.mrb[26].mxu0  ;;  %v1391_v40 = vmul.f32 0.5, %v4518_v21 }
 0x223   : > { %4948 = vst [vmem:[#allocation45_spill] sm:$0xff] %v4592_v44  ;;  %v4596_v47 = vpop.f32.mrb[27].mxu1  ;;  %v4598_v5 = vpop.f32.mrb[27].mxu0  ;;  %v1392_v44 = vmul.f32 0.5, %v4522_v24 }
 0x224   : > { %4949 = vst [vmem:[#allocation46_spill] sm:$0xff] %v4596_v47  ;;  %v3418_v62 = vpop.eup %3417  ;;  %v1512_v47 = vadd.f32 1.0, %v3416_v48  ;;  %3429 = vtanh.f32 %v1391_v40  ;;  %v1575_v48 = vmul.f32 0.5, %v1511_v58 }
 0x225   : > { %v3420_v42 = vpop.eup %3419  ;;  %v1513_v39 = vadd.f32 1.0, %v3418_v62  ;;  %3431 = vtanh.f32 %v1392_v44 }
 0x226   : > { %v3422_v23 = vpop.eup %3421  ;;  %v1576_v33 = vmul.f32 0.5, %v1512_v47  ;;  %3433 = vtanh.f32 %v1393_v51  ;;  %v1639_v40 = vmul.f32 %v1575_v48, %v4486_v63  ;;  %v1397_v51 = vmul.f32 0.5, %v4542_v34 }
 0x227   : > { %v3424_v31 = vpop.eup %3423  ;;  %v1577_v29 = vmul.f32 0.5, %v1513_v39  ;;  %3435 = vtanh.f32 %v1394_v54 }
 0x228   : > { %v4603_v56 = vpop.f32.mrb[28].mxu1  ;;  %v4605_v14 = vpop.f32.mrb[28].mxu0  ;;  %v1640_v44 = vmul.f32 %v1576_v33, %v4490_v6  ;;  %v1516_v22 = vadd.f32 1.0, %v3424_v31  ;;  %3437 = vtanh.f32 %v1395_v61  ;;  %v1398_v31 = vmul.f32 0.5, %v4546_v36 }
 0x229   : > { %4950 = vst [vmem:[#allocation47_spill] sm:$0xff] %v4603_v56  ;;  %v4608_v49 = vpop.f32.mrb[29].mxu1  ;;  %v4610_v35 = vpop.f32.mrb[29].mxu0  ;;  %3439 = vtanh.f32 %v1396_v27 }
 0x22a   : > { %4951 = vst [vmem:[#allocation48_spill] sm:$0xff] %v4608_v49  ;;  %v4612_v2 = vpop.f32.mrb[30].mxu1  ;;  %v4614_v45 = vpop.f32.mrb[30].mxu0  ;;  %v1514_v49 = vadd.f32 1.0, %v3420_v42  ;;  %3441 = vtanh.f32 %v1397_v51 }
 0x22b   : > { %4952 = vst [vmem:[#allocation49_spill] sm:$0xff] %v4612_v2  ;;  %v4616_v37 = vpop.f32.mrb[31].mxu1  ;;  %v4618_v56 = vpop.f32.mrb[31].mxu0  ;;  %v1638_v2 = vmul.f32 %v1574_v46, %v4482_v55  ;;  %v1641_v46 = vmul.f32 %v1577_v29, %v4494_v8  ;;  %v1399_v29 = vmul.f32 0.5, %v4550_v38  ;;  %3443 = vtanh.f32 %v1398_v31 }
 0x22c   : > { %4953 = vst [vmem:[#allocation50_spill] sm:$0xff] %v4616_v37  ;;  %v3426_v62 = vpop.eup %3425  ;;  %v1515_v37 = vadd.f32 1.0, %v3422_v23  ;;  %v1578_v25 = vmul.f32 0.5, %v1514_v49  ;;  %v1580_v49 = vmul.f32 0.5, %v1516_v22 }
 0x22d   : > { %v1517_v20 = vadd.f32 1.0, %v3426_v62  ;;  %v3428_v23 = vpop.eup %3427  ;;  %v1400_v62 = vmul.f32 0.5, %v4554_v41  ;;  %3445 = vtanh.f32 %v1399_v29 }
 0x22e   : > { %v1579_v48 = vmul.f32 0.5, %v1515_v37  ;;  %v3430_v16 = vpop.eup %3429  ;;  %v1518_v8 = vadd.f32 1.0, %v3428_v23 }
 0x22f   : > { %v3432_v33 = vpop.eup %3431  ;;  %v1519_v27 = vadd.f32 1.0, %v3430_v16  ;;  %3447 = vtanh.f32 %v1400_v62 }
 0x230   : > { %v1223_v58 = vpop.f32.mrb[32].mxu1  ;;  %v1643_v37 = vmul.f32 %v1579_v48, %v4502_v12  ;;  %v1520_v51 = vadd.f32 1.0, %v3432_v33  ;;  %v1582_v12 = vmul.f32 0.5, %v1518_v8 }
 0x231   : > { %v1702_v42 = vmul.f32 %v1638_v2, %v1223_v58  ;;  %v1225_v47 = vpop.f32.mrb[33].mxu1  ;;  %v1642_v2 = vmul.f32 %v1578_v25, %v4498_v10  ;;  %v1581_v58 = vmul.f32 0.5, %v1517_v20 }
 0x232   : > { %v1703_v55 = vmul.f32 %v1639_v40, %v1225_v47  ;;  %v1227_v39 = vpop.f32.mrb[34].mxu1  ;;  %v3434_v40 = vpop.eup %3433  ;;  %v1401_v47 = vmul.f32 0.5, %v4558_v43  ;;  %v1584_v48 = vmul.f32 0.5, %v1520_v51 }
 0x233   : > { %v1229_v63 = vpop.f32.mrb[35].mxu1  ;;  %v1704_v18 = vmul.f32 %v1640_v44, %v1227_v39  ;;  %v1521_v25 = vadd.f32 1.0, %v3434_v40  ;;  %v3436_v39 = vpop.eup %3435  ;;  %v1403_v40 = vmul.f32 0.5, %v4569_v53 }
 0x234   : > { %v1705_v6 = vmul.f32 %v1641_v46, %v1229_v63  ;;  %v1583_v46 = vmul.f32 0.5, %v1519_v27  ;;  %v3438_v23 = vpop.eup %3437  ;;  %3449 = vtanh.f32 %v1401_v47  ;;  %v1648_v27 = vmul.f32 %v1584_v48, %v4522_v24 }
 0x235   : > { %v1830_v54 = vpack.c.bf16 %v1704_v18, %v1702_v42  ;;  %v1644_v18 = vmul.f32 %v1580_v49, %v4506_v15  ;;  %v3440_v33 = vpop.eup %3439  ;;  %v1585_v15 = vmul.f32 0.5, %v1521_v25  ;;  %v1523_v29 = vadd.f32 1.0, %v3438_v23 }
 0x236   : > { %v1831_v61 = vpack.c.bf16 %v1705_v6, %v1703_v55  ;;  %v1645_v55 = vmul.f32 %v1581_v58, %v4510_v17  ;;  %v3442_v31 = vpop.eup %3441  ;;  %v1522_v17 = vadd.f32 1.0, %v3436_v39  ;;  %v1647_v8 = vmul.f32 %v1583_v46, %v4518_v21 }
 0x237   : > { %v1524_v62 = vadd.f32 1.0, %v3440_v33 }
 0x238   : > { %v1233_v44 = vpop.f32.mrb[36].mxu1  ;;  %2086 = vmatprep.mubr.bf16.mxu0 %v1831_v61  ;;  %v1404_v61 = vmul.f32 0.5, %v4574_v57  ;;  %v1586_v21 = vmul.f32 0.5, %v1522_v17 }
 0x239   : > { %v1706_v10 = vmul.f32 %v1642_v2, %v1233_v44  ;;  %v1235_v22 = vpop.f32.mrb[37].mxu1  ;;  %2087 = vmatmul.mubr.bf16.vlgmr.msra.gmra.mrb[32].mxu0 %v1830_v54  ;;  %v1402_v2 = vmul.f32 0.5, %v4565_v50  ;;  %v1646_v54 = vmul.f32 %v1582_v12, %v4514_v19  ;;  %v1405_v44 = vmul.f32 0.5, %v4578_v59 }
 0x23a   : > { %v1707_v20 = vmul.f32 %v1643_v37, %v1235_v22  ;;  %v1237_v42 = vpop.f32.mrb[38].mxu1  ;;  %v1649_v19 = vmul.f32 %v1585_v15, %v4526_v26  ;;  %v1406_v26 = vmul.f32 0.5, %v4584_v0  ;;  %v1407_v15 = vmul.f32 0.5, %v4589_v1 }
 0x23b   : > { %v1239_v16 = vpop.f32.mrb[39].mxu1  ;;  %v1708_v63 = vmul.f32 %v1644_v18, %v1237_v42  ;;  %3451 = vtanh.f32 %v1402_v2  ;;  %v3444_v42 = vpop.eup %3443 }
 0x23c   : > { %v1709_v6 = vmul.f32 %v1645_v55, %v1239_v16  ;;  %3453 = vtanh.f32 %v1403_v40  ;;  %v1587_v55 = vmul.f32 0.5, %v1523_v29  ;;  %v3446_v12 = vpop.eup %3445  ;;  %v1588_v16 = vmul.f32 0.5, %v1524_v62 }
 0x23d   : > { %v1832_v49 = vpack.c.bf16 %v1708_v63, %v1706_v10  ;;  %v1525_v10 = vadd.f32 1.0, %v3442_v31  ;;  %3455 = vtanh.f32 %v1404_v61  ;;  %v3448_v46 = vpop.eup %3447  ;;  %v1526_v33 = vadd.f32 1.0, %v3444_v42 }
 0x23e   : > { %v1833_v58 = vpack.c.bf16 %v1709_v6, %v1707_v20  ;;  %3457 = vtanh.f32 %v1405_v44  ;;  %v3450_v48 = vpop.eup %3449  ;;  %v1650_v6 = vmul.f32 %v1586_v21, %v4530_v28  ;;  %v1651_v2 = vmul.f32 %v1587_v55, %v4534_v30 }
 0x23f   : > { %v1589_v63 = vmul.f32 0.5, %v1525_v10  ;;  %v1408_v31 = vmul.f32 0.5, %v4594_v3  ;;  %v1652_v17 = vmul.f32 %v1588_v16, %v4538_v32  ;;  %v1528_v40 = vadd.f32 1.0, %v3448_v46 }
 0x240   : > { %v1243_v37 = vpop.f32.mrb[40].mxu1  ;;  %2096 = vmatprep.mubr.bf16.mxu0 %v1833_v58  ;;  %v1409_v58 = vmul.f32 0.5, %v4598_v5  ;;  %v1529_v28 = vadd.f32 1.0, %v3450_v48  ;;  %3459 = vtanh.f32 %v1406_v26  ;;  %v1590_v30 = vmul.f32 0.5, %v1526_v33 }
 0x241   : > { %v1710_v51 = vmul.f32 %v1646_v54, %v1243_v37  ;;  %v1245_v47 = vpop.f32.mrb[41].mxu1  ;;  %2097 = vmatmul.mubr.bf16.gmra.mrb[36].mxu0 %v1832_v49  ;;  %v1527_v49 = vadd.f32 1.0, %v3446_v12  ;;  %v1653_v61 = vmul.f32 %v1589_v63, %v4542_v34  ;;  %3461 = vtanh.f32 %v1407_v15 }
 0x242   : > { %v1711_v22 = vmul.f32 %v1647_v8, %v1245_v47  ;;  %v1247_v18 = vpop.f32.mrb[42].mxu1  ;;  %3463 = vtanh.f32 %v1408_v31  ;;  %v1592_v10 = vmul.f32 0.5, %v1528_v40  ;;  %v1593_v21 = vmul.f32 0.5, %v1529_v28 }
 0x243   : > { %v1712_v25 = vmul.f32 %v1648_v27, %v1247_v18  ;;  %v1249_v20 = vpop.f32.mrb[43].mxu1  ;;  %v1591_v47 = vmul.f32 0.5, %v1527_v49  ;;  %3465 = vtanh.f32 %v1409_v58  ;;  %v1410_v34 = vmul.f32 0.5, %v4605_v14 }
 0x244   : > { %v1713_v24 = vmul.f32 %v1649_v19, %v1249_v20  ;;  %v1654_v42 = vmul.f32 %v1590_v30, %v4546_v36  ;;  %v1656_v63 = vmul.f32 %v1592_v10, %v4554_v41  ;;  %v1657_v33 = vmul.f32 %v1593_v21, %v4558_v43 }
 0x245   : > { %v1834_v39 = vpack.c.bf16 %v1712_v25, %v1710_v51  ;;  %v3452_v51 = vpop.eup %3451  ;;  %v1655_v12 = vmul.f32 %v1591_v47, %v4550_v38  ;;  %3467 = vtanh.f32 %v1410_v34  ;;  %v1414_v43 = vmul.f32 0.5, %v4480_v52 }
 0x246   : > { %v1835_v23 = vpack.c.bf16 %v1713_v24, %v1711_v22  ;;  %v3454_v19 = vpop.eup %3453  ;;  %v1530_v55 = vadd.f32 1.0, %v3452_v51  ;;  %v1411_v24 = vmul.f32 0.5, %v4610_v35 }
 0x247   : > { %v3456_v18 = vpop.eup %3455  ;;  %v1531_v16 = vadd.f32 1.0, %v3454_v19  ;;  %v1417_v19 = vmul.f32 0.5, %v4492_v7 }
 0x248   : > { %v1253_v54 = vpop.f32.mrb[44].mxu1  ;;  %2106 = vmatprep.mubr.bf16.mxu0 %v1835_v23  ;;  %v3458_v20 = vpop.eup %3457  ;;  %v1532_v26 = vadd.f32 1.0, %v3456_v18  ;;  %v1413_v23 = vmul.f32 0.5, %v4618_v56  ;;  %v1594_v38 = vmul.f32 0.5, %v1530_v55  ;;  %3469 = vtanh.f32 %v1411_v24 }
 0x249   : > { %v1714_v8 = vmul.f32 %v1650_v6, %v1253_v54  ;;  %v1255_v29 = vpop.f32.mrb[45].mxu1  ;;  %2107 = vmatmul.mubr.bf16.gmra.mrb[40].mxu0 %v1834_v39  ;;  %v1412_v39 = vmul.f32 0.5, %v4614_v45  ;;  %v1533_v36 = vadd.f32 1.0, %v3458_v20 }
 0x24a   : > { %v1715_v37 = vmul.f32 %v1651_v2, %v1255_v29  ;;  %v1257_v27 = vpop.f32.mrb[46].mxu1  ;;  %v3460_v54 = vpop.eup %3459  ;;  %v1596_v58 = vmul.f32 0.5, %v1532_v26  ;;  %v1658_v30 = vmul.f32 %v1594_v38, %v4565_v50  ;;  %v1418_v26 = vmul.f32 0.5, %v4496_v9 }
 0x24b   : > { %v1716_v62 = vmul.f32 %v1652_v17, %v1257_v27  ;;  %v1259_v44 = vpop.f32.mrb[47].mxu1  ;;  %v1595_v17 = vmul.f32 0.5, %v1531_v16  ;;  %3471 = vtanh.f32 %v1412_v39  ;;  %v3462_v40 = vpop.eup %3461  ;;  %v1415_v27 = vmul.f32 0.5, %v4484_v60 }
 0x24c   : > { %v1717_v32 = vmul.f32 %v1653_v61, %v1259_v44  ;;  %3473 = vtanh.f32 %v1413_v23  ;;  %v3464_v29 = vpop.eup %3463  ;;  %v1597_v61 = vmul.f32 0.5, %v1533_v36  ;;  %v1416_v44 = vmul.f32 0.5, %v4488_v4 }
 0x24d   : > { %v1836_v22 = vpack.c.bf16 %v1716_v62, %v1714_v8  ;;  %v1534_v62 = vadd.f32 1.0, %v3460_v54  ;;  %v1659_v51 = vmul.f32 %v1595_v17, %v4569_v53  ;;  %v1535_v47 = vadd.f32 1.0, %v3462_v40 }
 0x24e   : > { %v1837_v25 = vpack.c.bf16 %v1717_v32, %v1715_v37  ;;  %v3466_v37 = vpop.eup %3465  ;;  %v1660_v10 = vmul.f32 %v1596_v58, %v4574_v57  ;;  %3475 = vtanh.f32 %v1414_v43  ;;  %v1661_v34 = vmul.f32 %v1597_v61, %v4578_v59 }
 0x24f   : > { %3477 = vtanh.f32 %v1415_v27  ;;  %v3468_v24 = vpop.eup %3467 }
 0x250   : > { %v1263_v46 = vpop.f32.mrb[48].mxu1  ;;  %2116 = vmatprep.mubr.bf16.mxu0 %v1837_v25  ;;  %v1537_v25 = vadd.f32 1.0, %v3466_v37  ;;  %3479 = vtanh.f32 %v1416_v44  ;;  %v1538_v36 = vadd.f32 1.0, %v3468_v24  ;;  %v4958_v24 = vld [vmem:[#allocation30_spill] sm:$0xff] }
 0x251   : > { %v1718_v48 = vmul.f32 %v1654_v42, %v1263_v46  ;;  %v1265_v6 = vpop.f32.mrb[49].mxu1  ;;  %2117 = vmatmul.mubr.bf16.gmra.mrb[44].mxu0 %v1836_v22  ;;  %v1536_v22 = vadd.f32 1.0, %v3464_v29  ;;  %v1598_v42 = vmul.f32 0.5, %v1534_v62  ;;  %3481 = vtanh.f32 %v1417_v19 }
 0x252   : > { %v1719_v15 = vmul.f32 %v1655_v12, %v1265_v6  ;;  %v1267_v2 = vpop.f32.mrb[50].mxu1  ;;  %v1599_v12 = vmul.f32 0.5, %v1535_v47  ;;  %v3470_v39 = vpop.eup %3469  ;;  %v1601_v59 = vmul.f32 0.5, %v1537_v25  ;;  %v1419_v6 = vmul.f32 0.5, %v4500_v11  ;;  %v4955_v47 = vld [vmem:[#allocation27_spill] sm:$0xff] }
 0x253   : > { %v1720_v49 = vmul.f32 %v1656_v63, %v1267_v2  ;;  %v1269_v31 = vpop.f32.mrb[51].mxu1  ;;  %v1600_v57 = vmul.f32 0.5, %v1536_v22  ;;  %v1539_v38 = vadd.f32 1.0, %v3470_v39  ;;  %3483 = vtanh.f32 %v1418_v26 }
 0x254   : > { %v1721_v41 = vmul.f32 %v1657_v33, %v1269_v31  ;;  %v1662_v33 = vmul.f32 %v1598_v42, %v4584_v0  ;;  %v1663_v2 = vmul.f32 %v1599_v12, %v4589_v1  ;;  %v4954_v31 = vld [vmem:[#allocation26_spill] sm:$0xff]  ;;  %3485 = vtanh.f32 %v1419_v6 }
 0x255   : > { %v1838_v8 = vpack.c.bf16 %v1720_v49, %v1718_v48  ;;  %v3472_v63 = vpop.eup %3471  ;;  %v1421_v54 = vmul.f32 0.5, %v4954_v31  ;;  %v1664_v17 = vmul.f32 %v1600_v57, %v4594_v3  ;;  %v1602_v61 = vmul.f32 0.5, %v1538_v36 }
 0x256   : > { %v1839_v28 = vpack.c.bf16 %v1721_v41, %v1719_v15  ;;  %v3474_v48 = vpop.eup %3473  ;;  %v1420_v15 = vmul.f32 0.5, %v4504_v13  ;;  %v1540_v41 = vadd.f32 1.0, %v3472_v63  ;;  %v1603_v27 = vmul.f32 0.5, %v1539_v38 }
 0x257   : > { %v1541_v29 = vadd.f32 1.0, %v3474_v48  ;;  %v1425_v12 = vmul.f32 0.5, %v4958_v24 }
 0x258   : > { %v1273_v32 = vpop.f32.mrb[52].mxu1  ;;  %2126 = vmatprep.mubr.bf16.mxu0 %v1839_v28  ;;  %v3476_v37 = vpop.eup %3475  ;;  %3487 = vtanh.f32 %v1420_v15  ;;  %v1604_v3 = vmul.f32 0.5, %v1540_v41  ;;  %v1667_v42 = vmul.f32 %v1603_v27, %v4610_v35  ;;  %v4962_v27 = vld [vmem:[#allocation34_spill] sm:$0xff] }
 0x259   : > { %v1722_v18 = vmul.f32 %v1658_v30, %v1273_v32  ;;  %v1275_v21 = vpop.f32.mrb[53].mxu1  ;;  %2127 = vmatmul.mubr.bf16.gmra.mrb[48].mxu0 %v1838_v8  ;;  %v1665_v8 = vmul.f32 %v1601_v59, %v4598_v5  ;;  %v3478_v62 = vpop.eup %3477  ;;  %3489 = vtanh.f32 %v1421_v54  ;;  %v1422_v32 = vmul.f32 0.5, %v4955_v47 }
 0x25a   : > { %v1723_v50 = vmul.f32 %v1659_v51, %v1275_v21  ;;  %v1277_v20 = vpop.f32.mrb[54].mxu1  ;;  %v3480_v51 = vpop.eup %3479  ;;  %v1605_v5 = vmul.f32 0.5, %v1541_v29  ;;  %v1542_v22 = vadd.f32 1.0, %v3476_v37  ;;  %v1543_v25 = vadd.f32 1.0, %v3478_v62 }
 0x25b   : > { %v1724_v53 = vmul.f32 %v1660_v10, %v1277_v20  ;;  %v1279_v55 = vpop.f32.mrb[55].mxu1  ;;  %v3482_v10 = vpop.eup %3481  ;;  %3491 = vtanh.f32 %v1422_v32 }
 0x25c   : > { %v1725_v16 = vmul.f32 %v1661_v34, %v1279_v55  ;;  %v1666_v34 = vmul.f32 %v1602_v61, %v4605_v14  ;;  %v1544_v55 = vadd.f32 1.0, %v3480_v51  ;;  %v1669_v63 = vmul.f32 %v1605_v5, %v4618_v56 }
 0x25d   : > { %v1840_v46 = vpack.c.bf16 %v1724_v53, %v1722_v18  ;;  %v4956_v18 = vld [vmem:[#allocation28_spill] sm:$0xff]  ;;  %v1606_v59 = vmul.f32 0.5, %v1542_v22  ;;  %v3484_v48 = vpop.eup %3483  ;;  %v1607_v6 = vmul.f32 0.5, %v1543_v25 }
 0x25e   : > { %v1841_v23 = vpack.c.bf16 %v1725_v16, %v1723_v50  ;;  %v1423_v21 = vmul.f32 0.5, %v4956_v18  ;;  %v4957_v50 = vld [vmem:[#allocation29_spill] sm:$0xff]  ;;  %v1668_v16 = vmul.f32 %v1604_v3, %v4614_v45  ;;  %v3486_v36 = vpop.eup %3485  ;;  %v1608_v15 = vmul.f32 0.5, %v1544_v55 }
 0x25f   : > { %v1424_v20 = vmul.f32 0.5, %v4957_v50  ;;  %v1670_v41 = vmul.f32 %v1606_v59, %v4480_v52  ;;  %v1671_v29 = vmul.f32 %v1607_v6, %v4484_v60  ;;  %v4966_v6 = vld [vmem:[#allocation38_spill] sm:$0xff] }
 0x260   : > { %v1283_v49 = vpop.f32.mrb[56].mxu1  ;;  %2136 = vmatprep.mubr.bf16.mxu0 %v1841_v23  ;;  %3493 = vtanh.f32 %v1423_v21 }
 0x261   : > { %v1726_v40 = vmul.f32 %v1662_v33, %v1283_v49  ;;  %v1285_v58 = vpop.f32.mrb[57].mxu1  ;;  %2137 = vmatmul.mubr.bf16.gmra.mrb[52].mxu0 %v1840_v46  ;;  %v1545_v46 = vadd.f32 1.0, %v3482_v10  ;;  %3495 = vtanh.f32 %v1424_v20  ;;  %v4959_v49 = vld [vmem:[#allocation31_spill] sm:$0xff] }
 0x262   : > { %v1727_v0 = vmul.f32 %v1663_v2, %v1285_v58  ;;  %v1287_v43 = vpop.f32.mrb[58].mxu1  ;;  %3497 = vtanh.f32 %v1425_v12  ;;  %v3488_v2 = vpop.eup %3487  ;;  %v1426_v54 = vmul.f32 0.5, %v4959_v49  ;;  %v4960_v58 = vld [vmem:[#allocation32_spill] sm:$0xff] }
 0x263   : > { %v1728_v1 = vmul.f32 %v1664_v17, %v1287_v43  ;;  %v1289_v28 = vpop.f32.mrb[59].mxu1  ;;  %v1609_v38 = vmul.f32 0.5, %v1545_v46  ;;  %v3490_v17 = vpop.eup %3489  ;;  %v4961_v43 = vld [vmem:[#allocation33_spill] sm:$0xff]  ;;  %v1548_v37 = vadd.f32 1.0, %v3488_v2 }
 0x264   : > { %v1729_v30 = vmul.f32 %v1665_v8, %v1289_v28  ;;  %v1427_v8 = vmul.f32 0.5, %v4960_v58  ;;  %v1428_v61 = vmul.f32 0.5, %v4961_v43  ;;  %v1672_v28 = vmul.f32 %v1608_v15, %v4488_v4 }
 0x265   : > { %v1842_v44 = vpack.c.bf16 %v1728_v1, %v1726_v40  ;;  %v1546_v40 = vadd.f32 1.0, %v3484_v48  ;;  %v1549_v52 = vadd.f32 1.0, %v3490_v17  ;;  %3499 = vtanh.f32 %v1426_v54  ;;  %v3492_v10 = vpop.eup %3491 }
 0x266   : > { %v1843_v19 = vpack.c.bf16 %v1729_v30, %v1727_v0  ;;  %v1547_v0 = vadd.f32 1.0, %v3486_v36  ;;  %v1429_v30 = vmul.f32 0.5, %v4962_v27  ;;  %3501 = vtanh.f32 %v1427_v8 }
 0x267   : > { %v1610_v60 = vmul.f32 0.5, %v1546_v40  ;;  %3503 = vtanh.f32 %v1428_v61 }
 0x268   : > { %v1293_v53 = vpop.f32.mrb[60].mxu1  ;;  %2146 = vmatprep.mubr.bf16.mxu0 %v1843_v19  ;;  %v1611_v22 = vmul.f32 0.5, %v1547_v0  ;;  %3505 = vtanh.f32 %v1429_v30 }
 0x269   : > { %v1730_v39 = vmul.f32 %v1666_v34, %v1293_v53  ;;  %v1295_v57 = vpop.f32.mrb[61].mxu1  ;;  %2147 = vmatmul.mubr.bf16.gmra.mrb[56].mxu0 %v1842_v44  ;;  %v1673_v44 = vmul.f32 %v1609_v38, %v4492_v7  ;;  %v1612_v34 = vmul.f32 0.5, %v1548_v37  ;;  %v4963_v7 = vld [vmem:[#allocation35_spill] sm:$0xff] }
 0x26a   : > { %v1731_v26 = vmul.f32 %v1667_v42, %v1295_v57  ;;  %v1297_v14 = vpop.f32.mrb[62].mxu1  ;;  %v3494_v21 = vpop.eup %3493  ;;  %v1613_v42 = vmul.f32 0.5, %v1549_v52  ;;  %v1430_v53 = vmul.f32 0.5, %v4963_v7  ;;  %v4964_v57 = vld [vmem:[#allocation36_spill] sm:$0xff] }
 0x26b   : > { %v1732_v23 = vmul.f32 %v1668_v16, %v1297_v14  ;;  %v1299_v35 = vpop.f32.mrb[63].mxu1  ;;  %v3496_v20 = vpop.eup %3495  ;;  %v1674_v16 = vmul.f32 %v1610_v60, %v4496_v9  ;;  %v1431_v46 = vmul.f32 0.5, %v4964_v57  ;;  %v4965_v14 = vld [vmem:[#allocation37_spill] sm:$0xff] }
 0x26c   : > { %v1733_v33 = vmul.f32 %v1669_v63, %v1299_v35  ;;  %v3498_v12 = vpop.eup %3497  ;;  %v1675_v63 = vmul.f32 %v1611_v22, %v4500_v11  ;;  %v1432_v59 = vmul.f32 0.5, %v4965_v14  ;;  %v1676_v35 = vmul.f32 %v1612_v34, %v4504_v13  ;;  %v4970_v22 = vld [vmem:[#allocation42_spill] sm:$0xff] }
 0x26d   : > { %v1844_v45 = vpack.c.bf16 %v1732_v23, %v1730_v39  ;;  %v1550_v39 = vadd.f32 1.0, %v3492_v10  ;;  %v1552_v48 = vadd.f32 1.0, %v3496_v20  ;;  %v1553_v9 = vadd.f32 1.0, %v3498_v12 }
 0x26e   : > { %v1845_v56 = vpack.c.bf16 %v1733_v33, %v1731_v26  ;;  %v1551_v26 = vadd.f32 1.0, %v3494_v21  ;;  %v1433_v33 = vmul.f32 0.5, %v4966_v6  ;;  %3507 = vtanh.f32 %v1430_v53 }
 0x26f   : > { %v1614_v11 = vmul.f32 0.5, %v1550_v39  ;;  %3509 = vtanh.f32 %v1431_v46  ;;  %v3500_v17 = vpop.eup %3499  ;;  %v1616_v8 = vmul.f32 0.5, %v1552_v48  ;;  %v1617_v61 = vmul.f32 0.5, %v1553_v9 }
 0x270   : > { %v1303_v1 = vpop.f32.mrb[64].mxu1  ;;  %2156 = vmatprep.mubr.bf16.mxu0 %v1845_v56  ;;  %3511 = vtanh.f32 %v1432_v59  ;;  %v3502_v40 = vpop.eup %3501 }
 0x271   : > { %v1734_v62 = vmul.f32 %v1670_v41, %v1303_v1  ;;  %v1305_v3 = vpop.f32.mrb[65].mxu1  ;;  %2157 = vmatmul.mubr.bf16.gmra.mrb[60].mxu0 %v1844_v45  ;;  %v1677_v45 = vmul.f32 %v1613_v42, %v4954_v31  ;;  %v1615_v41 = vmul.f32 0.5, %v1551_v26  ;;  %3513 = vtanh.f32 %v1433_v33  ;;  %v3504_v0 = vpop.eup %3503  ;;  %v4967_v31 = vld [vmem:[#allocation39_spill] sm:$0xff] }
 0x272   : > { %v1735_v51 = vmul.f32 %v1671_v29, %v1305_v3  ;;  %v1307_v32 = vpop.f32.mrb[66].mxu1  ;;  %v1434_v1 = vmul.f32 0.5, %v4967_v31  ;;  %v3506_v37 = vpop.eup %3505  ;;  %v1678_v30 = vmul.f32 %v1614_v11, %v4955_v47  ;;  %v4968_v3 = vld [vmem:[#allocation40_spill] sm:$0xff]  ;;  %v1556_v10 = vadd.f32 1.0, %v3504_v0 }
 0x273   : > { %v1736_v5 = vmul.f32 %v1672_v28, %v1307_v32  ;;  %v1309_v19 = vpop.f32.mrb[67].mxu1  ;;  %v1679_v52 = vmul.f32 %v1615_v41, %v4956_v18  ;;  %v4969_v32 = vld [vmem:[#allocation41_spill] sm:$0xff]  ;;  %v1557_v47 = vadd.f32 1.0, %v3506_v37  ;;  %v4974_v41 = vld [vmem:[#allocation46_spill] sm:$0xff] }
 0x274   : > { %v1737_v4 = vmul.f32 %v1673_v44, %v1309_v19  ;;  %v1435_v44 = vmul.f32 0.5, %v4968_v3  ;;  %v1436_v60 = vmul.f32 0.5, %v4969_v32  ;;  %v1680_v19 = vmul.f32 %v1616_v8, %v4957_v50 }
 0x275   : > { %v1846_v25 = vpack.c.bf16 %v1736_v5, %v1734_v62  ;;  %v1554_v62 = vadd.f32 1.0, %v3500_v17  ;;  %3515 = vtanh.f32 %v1434_v1  ;;  %v1620_v46 = vmul.f32 0.5, %v1556_v10 }
 0x276   : > { %v1847_v55 = vpack.c.bf16 %v1737_v4, %v1735_v51  ;;  %v1555_v51 = vadd.f32 1.0, %v3502_v40  ;;  %v1437_v4 = vmul.f32 0.5, %v4970_v22  ;;  %3517 = vtanh.f32 %v1435_v44 }
 0x277   : > { %v1618_v18 = vmul.f32 0.5, %v1554_v62  ;;  %3519 = vtanh.f32 %v1436_v60  ;;  %v1621_v59 = vmul.f32 0.5, %v1557_v47 }
 0x278   : > { %v1313_v23 = vpop.f32.mrb[68].mxu1  ;;  %2166 = vmatprep.mubr.bf16.mxu0 %v1847_v55  ;;  %v3508_v12 = vpop.eup %3507  ;;  %3521 = vtanh.f32 %v1437_v4 }
 0x279   : > { %v1738_v36 = vmul.f32 %v1674_v16, %v1313_v23  ;;  %v1315_v15 = vpop.f32.mrb[69].mxu1  ;;  %2167 = vmatmul.mubr.bf16.gmra.mrb[64].mxu0 %v1846_v25  ;;  %v1681_v25 = vmul.f32 %v1617_v61, %v4958_v24  ;;  %v1619_v16 = vmul.f32 0.5, %v1555_v51  ;;  %v3510_v39 = vpop.eup %3509  ;;  %v4971_v24 = vld [vmem:[#allocation43_spill] sm:$0xff]  ;;  %v1682_v33 = vmul.f32 %v1618_v18, %v4959_v49 }
 0x27a   : > { %v1739_v2 = vmul.f32 %v1675_v63, %v1315_v15  ;;  %v1317_v38 = vpop.f32.mrb[70].mxu1  ;;  %v3512_v26 = vpop.eup %3511  ;;  %v1438_v23 = vmul.f32 0.5, %v4971_v24  ;;  %v4972_v15 = vld [vmem:[#allocation44_spill] sm:$0xff] }
 0x27b   : > { %v1740_v54 = vmul.f32 %v1676_v35, %v1317_v38  ;;  %v1319_v56 = vpop.f32.mrb[71].mxu1  ;;  %v3514_v48 = vpop.eup %3513  ;;  %v1683_v9 = vmul.f32 %v1619_v16, %v4960_v58  ;;  %v4973_v38 = vld [vmem:[#allocation45_spill] sm:$0xff]  ;;  %v1560_v17 = vadd.f32 1.0, %v3512_v26  ;;  %v4978_v16 = vld [vmem:[#allocation50_spill] sm:$0xff] }
 0x27c   : > { %v1741_v13 = vmul.f32 %v1677_v45, %v1319_v56  ;;  %v1439_v45 = vmul.f32 0.5, %v4972_v15  ;;  %v1440_v11 = vmul.f32 0.5, %v4973_v38  ;;  %v1684_v56 = vmul.f32 %v1620_v46, %v4961_v43 }
 0x27d   : > { %v1848_v29 = vpack.c.bf16 %v1740_v54, %v1738_v36  ;;  %v1558_v36 = vadd.f32 1.0, %v3508_v12  ;;  %v1561_v49 = vadd.f32 1.0, %v3514_v48  ;;  %3523 = vtanh.f32 %v1438_v23 }
 0x27e   : > { %v1849_v28 = vpack.c.bf16 %v1741_v13, %v1739_v2  ;;  %v1559_v2 = vadd.f32 1.0, %v3510_v39  ;;  %v1441_v13 = vmul.f32 0.5, %v4974_v41  ;;  %3525 = vtanh.f32 %v1439_v45 }
 0x27f   : > { %v1622_v58 = vmul.f32 0.5, %v1558_v36  ;;  %v3516_v37 = vpop.eup %3515  ;;  %3527 = vtanh.f32 %v1440_v11  ;;  %v1624_v44 = vmul.f32 0.5, %v1560_v17  ;;  %v1625_v60 = vmul.f32 0.5, %v1561_v49 }
 0x280   : > { %v1323_v5 = vpop.f32.mrb[72].mxu1  ;;  %2176 = vmatprep.mubr.bf16.mxu0 %v1849_v28  ;;  %v3518_v62 = vpop.eup %3517  ;;  %3529 = vtanh.f32 %v1441_v13 }
 0x281   : > { %v1742_v21 = vmul.f32 %v1678_v30, %v1323_v5  ;;  %v1325_v34 = vpop.f32.mrb[73].mxu1  ;;  %2177 = vmatmul.mubr.bf16.gmra.mrb[68].mxu0 %v1848_v29  ;;  %v1685_v29 = vmul.f32 %v1621_v59, %v4962_v27  ;;  %v1623_v30 = vmul.f32 0.5, %v1559_v2  ;;  %v3520_v51 = vpop.eup %3519  ;;  %v4975_v27 = vld [vmem:[#allocation47_spill] sm:$0xff]  ;;  %v1686_v4 = vmul.f32 %v1622_v58, %v4963_v7 }
 0x282   : > { %v1743_v20 = vmul.f32 %v1679_v52, %v1325_v34  ;;  %v1327_v42 = vpop.f32.mrb[74].mxu1  ;;  %v1442_v5 = vmul.f32 0.5, %v4975_v27  ;;  %v3522_v10 = vpop.eup %3521  ;;  %v4976_v34 = vld [vmem:[#allocation48_spill] sm:$0xff]  ;;  %v1564_v12 = vadd.f32 1.0, %v3520_v51 }
 0x283   : > { %v1744_v53 = vmul.f32 %v1680_v19, %v1327_v42  ;;  %v1329_v55 = vpop.f32.mrb[75].mxu1  ;;  %v1687_v47 = vmul.f32 %v1623_v30, %v4964_v57  ;;  %v4977_v42 = vld [vmem:[#allocation49_spill] sm:$0xff]  ;;  %v1565_v7 = vadd.f32 1.0, %v3522_v10 }
 0x284   : > { %v1745_v50 = vmul.f32 %v1681_v25, %v1329_v55  ;;  %v1443_v25 = vmul.f32 0.5, %v4976_v34  ;;  %v1444_v18 = vmul.f32 0.5, %v4977_v42  ;;  %v1688_v55 = vmul.f32 %v1624_v44, %v4965_v14 }
 0x285   : > { %v1850_v63 = vpack.c.bf16 %v1744_v53, %v1742_v21  ;;  %v1562_v21 = vadd.f32 1.0, %v3516_v37  ;;  %3531 = vtanh.f32 %v1442_v5  ;;  %v1628_v45 = vmul.f32 0.5, %v1564_v12 }
 0x286   : > { %v1851_v35 = vpack.c.bf16 %v1745_v50, %v1743_v20  ;;  %v1563_v20 = vadd.f32 1.0, %v3518_v62  ;;  %v1445_v50 = vmul.f32 0.5, %v4978_v16  ;;  %3533 = vtanh.f32 %v1443_v25 }
 0x287   : > { %v1626_v57 = vmul.f32 0.5, %v1562_v21  ;;  %v3524_v48 = vpop.eup %3523  ;;  %3535 = vtanh.f32 %v1444_v18  ;;  %v1629_v11 = vmul.f32 0.5, %v1565_v7 }
 0x288   : > { %v1333_v54 = vpop.f32.mrb[76].mxu1  ;;  %2186 = vmatprep.mubr.bf16.mxu0 %v1851_v35  ;;  %v3526_v36 = vpop.eup %3525  ;;  %3537 = vtanh.f32 %v1445_v50  ;;  %v1566_v17 = vadd.f32 1.0, %v3524_v48 }
 0x289   : > { %v1746_v40 = vmul.f32 %v1682_v33, %v1333_v54  ;;  %v1335_v8 = vpop.f32.mrb[77].mxu1  ;;  %2187 = vmatmul.mubr.bf16.gmra.mrb[72].mxu0 %v1850_v63  ;;  %v1689_v63 = vmul.f32 %v1625_v60, %v4966_v6  ;;  %v1627_v33 = vmul.f32 0.5, %v1563_v20  ;;  %v3528_v2 = vpop.eup %3527  ;;  %v1693_v58 = vmul.f32 %v1629_v11, %v4970_v22 }
 0x28a   : > { %v1747_v0 = vmul.f32 %v1683_v9, %v1335_v8  ;;  %v1337_v61 = vpop.f32.mrb[78].mxu1  ;;  %v3530_v54 = vpop.eup %3529  ;;  %v1568_v49 = vadd.f32 1.0, %v3528_v2  ;;  %v1630_v30 = vmul.f32 0.5, %v1566_v17 }
 0x28b   : > { %v1748_v1 = vmul.f32 %v1684_v56, %v1337_v61  ;;  %v1339_v28 = vpop.f32.mrb[79].mxu1  ;;  %v1690_v56 = vmul.f32 %v1626_v57, %v4967_v31  ;;  %v1691_v13 = vmul.f32 %v1627_v33, %v4968_v3 }
 0x28c   : > { %v1749_v43 = vmul.f32 %v1685_v29, %v1339_v28  ;;  %v1692_v29 = vmul.f32 %v1628_v45, %v4969_v32  ;;  %v1632_v51 = vmul.f32 0.5, %v1568_v49 }
 0x28d   : > { %v1852_v52 = vpack.c.bf16 %v1748_v1, %v1746_v40  ;;  %v1567_v40 = vadd.f32 1.0, %v3526_v36  ;;  %v1569_v1 = vadd.f32 1.0, %v3530_v54 }
 0x28e   : > { %v1853_v19 = vpack.c.bf16 %v1749_v43, %v1747_v0  ;;  %v1696_v20 = vmul.f32 %v1632_v51, %v4973_v38 }
 0x28f   : > { %v3532_v62 = vpop.eup %3531  ;;  %v1631_v44 = vmul.f32 0.5, %v1567_v40  ;;  %v1633_v32 = vmul.f32 0.5, %v1569_v1  ;;  %v1768_v40 = vld [vmem:[#allocation2 + $0x10] sm:$0xff]  ;;  %v1770_v1 = vld [vmem:[#allocation2 + $0x20] sm:$0xff] }
 0x290   : > { %v1343_v53 = vpop.f32.mrb[80].mxu1  ;;  %2196 = vmatprep.mubr.bf16.mxu0 %v1853_v19  ;;  %v1570_v22 = vadd.f32 1.0, %v3532_v62  ;;  %v1773_v62 = vld [vmem:[#allocation2 + $0x38] sm:$0xff] }
 0x291   : > { %v1750_v39 = vmul.f32 %v1686_v4, %v1343_v53  ;;  %v1345_v46 = vpop.f32.mrb[81].mxu1  ;;  %2197 = vmatmul.mubr.bf16.gmra.mrb[76].mxu0 %v1852_v52  ;;  %v3534_v52 = vpop.eup %3533  ;;  %v1694_v4 = vmul.f32 %v1630_v30, %v4971_v24  ;;  %v1695_v21 = vmul.f32 %v1631_v44, %v4972_v15  ;;  %v1697_v12 = vmul.f32 %v1633_v32, %v4974_v41  ;;  %v1772_v30 = vld [vmem:[#allocation2 + $0x30] sm:$0xff]  ;;  %v1775_v32 = vld [vmem:[#allocation2 + $0x48] sm:$0xff] }
 0x292   : > { %v1751_v26 = vmul.f32 %v1687_v47, %v1345_v46  ;;  %v1347_v59 = vpop.f32.mrb[82].mxu1  ;;  %v3536_v5 = vpop.eup %3535  ;;  %v1571_v25 = vadd.f32 1.0, %v3534_v52 }
 0x293   : > { %v1752_v23 = vmul.f32 %v1688_v55, %v1347_v59  ;;  %v1349_v35 = vpop.f32.mrb[83].mxu1  ;;  %v3538_v10 = vpop.eup %3537  ;;  %v1572_v18 = vadd.f32 1.0, %v3536_v5  ;;  %v1774_v5 = vld [vmem:[#allocation2 + $0x40] sm:$0xff] }
 0x294   : > { %v1753_v14 = vmul.f32 %v1689_v63, %v1349_v35  ;;  %v1573_v50 = vadd.f32 1.0, %v3538_v10  ;;  %v1634_v63 = vmul.f32 0.5, %v1570_v22  ;;  %v1776_v10 = vld [vmem:[#allocation2 + $0x50] sm:$0xff] }
 0x295   : > { %v1854_v9 = vpack.c.bf16 %v1752_v23, %v1750_v39  ;;  %v1636_v15 = vmul.f32 0.5, %v1572_v18 }
 0x296   : > { %v1855_v6 = vpack.c.bf16 %v1753_v14, %v1751_v26  ;;  %v1635_v26 = vmul.f32 0.5, %v1571_v25  ;;  %v1637_v23 = vmul.f32 0.5, %v1573_v50  ;;  %v1698_v38 = vmul.f32 %v1634_v63, %v4975_v27  ;;  %v1766_v27 = vld [vmem:[#allocation2] sm:$0xff] }
 0x297   : > { %v1700_v41 = vmul.f32 %v1636_v15, %v4977_v42 }
 0x298   : > { %v1353_v8 = vpop.f32.mrb[84].mxu1  ;;  %2206 = vmatprep.mubr.bf16.mxu0 %v1855_v6  ;;  %v1699_v48 = vmul.f32 %v1635_v26, %v4976_v34  ;;  %v1701_v45 = vmul.f32 %v1637_v23, %v4978_v16  ;;  %v1767_v34 = vld [vmem:[#allocation2 + $0x8] sm:$0xff]  ;;  %v1782_v23 = vld [vmem:[#allocation2 + $0x80] sm:$0xff] }
 0x299   : > { %v1754_v0 = vmul.f32 %v1690_v56, %v1353_v8  ;;  %v1355_v61 = vpop.f32.mrb[85].mxu1  ;;  %2207 = vmatmul.mubr.bf16.gmra.mrb[80].mxu0 %v1854_v9 }
 0x29a   : > { %v1755_v28 = vmul.f32 %v1691_v13, %v1355_v61  ;;  %v1357_v37 = vpop.f32.mrb[86].mxu1 }
 0x29b   : > { %v1756_v43 = vmul.f32 %v1692_v29, %v1357_v37  ;;  %v1359_v31 = vpop.f32.mrb[87].mxu1  ;;  %v1769_v29 = vld [vmem:[#allocation2 + $0x18] sm:$0xff] }
 0x29c   : > { %v1757_v3 = vmul.f32 %v1693_v58, %v1359_v31 }
 0x29d   : > { %v1856_v60 = vpack.c.bf16 %v1756_v43, %v1754_v0 }
 0x29e   : > { %v1857_v19 = vpack.c.bf16 %v1757_v3, %v1755_v28  ;;  %v1771_v28 = vld [vmem:[#allocation2 + $0x28] sm:$0xff] }
 0x2a0   : > { %v1363_v47 = vpop.f32.mrb[88].mxu1  ;;  %2216 = vmatprep.mubr.bf16.mxu0 %v1857_v19 }
 0x2a1   : > { %v1758_v53 = vmul.f32 %v1694_v4, %v1363_v47  ;;  %v1365_v55 = vpop.f32.mrb[89].mxu1  ;;  %2217 = vmatmul.mubr.bf16.gmra.mrb[84].mxu0 %v1856_v60 }
 0x2a2   : > { %v1759_v39 = vmul.f32 %v1695_v21, %v1365_v55  ;;  %v1367_v46 = vpop.f32.mrb[90].mxu1  ;;  %v1777_v21 = vld [vmem:[#allocation2 + $0x58] sm:$0xff]  ;;  %v1778_v55 = vld [vmem:[#allocation2 + $0x60] sm:$0xff] }
 0x2a3   : > { %v1760_v7 = vmul.f32 %v1696_v20, %v1367_v46  ;;  %v1369_v24 = vpop.f32.mrb[91].mxu1 }
 0x2a4   : > { %v1761_v59 = vmul.f32 %v1697_v12, %v1369_v24  ;;  %v1779_v12 = vld [vmem:[#allocation2 + $0x68] sm:$0xff] }
 0x2a5   : > { %v1858_v57 = vpack.c.bf16 %v1760_v7, %v1758_v53  ;;  %v1781_v7 = vld [vmem:[#allocation2 + $0x78] sm:$0xff] }
 0x2a6   : > { %v1859_v35 = vpack.c.bf16 %v1761_v59, %v1759_v39  ;;  %v1780_v39 = vld [vmem:[#allocation2 + $0x70] sm:$0xff] }
 0x2a8   : > { %v1373_v33 = vpop.f32.mrb[92].mxu1  ;;  %2226 = vmatprep.mubr.bf16.mxu0 %v1859_v35  ;;  %v1783_v35 = vld [vmem:[#allocation2 + $0x88] sm:$0xff] }
 0x2a9   : > { %v1762_v14 = vmul.f32 %v1698_v38, %v1373_v33  ;;  %v1375_v36 = vpop.f32.mrb[93].mxu1  ;;  %2227 = vmatmul.mubr.bf16.gmra.mrb[88].mxu0 %v1858_v57 }
 0x2aa   : > { %v1763_v9 = vmul.f32 %v1699_v48, %v1375_v36  ;;  %v1377_v2 = vpop.f32.mrb[94].mxu1  ;;  %v1784_v48 = vld [vmem:[#allocation2 + $0x90] sm:$0xff] }
 0x2ab   : > { %v1764_v11 = vmul.f32 %v1700_v41, %v1377_v2  ;;  %v1379_v6 = vpop.f32.mrb[95].mxu1 }
 0x2ac   : > { %v1765_v54 = vmul.f32 %v1701_v45, %v1379_v6  ;;  %v1786_v6 = vld [vmem:[#allocation2 + $0xa0] sm:$0xff] }
 0x2ad   : > { %v1860_v56 = vpack.c.bf16 %v1764_v11, %v1762_v14  ;;  %v1785_v14 = vld [vmem:[#allocation2 + $0x98] sm:$0xff] }
 0x2ae   : > { %v1861_v17 = vpack.c.bf16 %v1765_v54, %v1763_v9  ;;  %v1787_v54 = vld [vmem:[#allocation2 + $0xa8] sm:$0xff] }
 0x2b0   : > { %2236 = vmatprep.mubr.bf16.mxu0 %v1861_v17  ;;  %v1788_v17 = vld [vmem:[#allocation2 + $0xb0] sm:$0xff] }
 0x2b1   : > { %2237 = vmatmul.mubr.bf16.gmra.mrb[92].mxu0 %v1860_v56 }
 0x30c   : > { %v2088_v13 = vpop.f32.mrb[32].mxu0 }
 0x30d   : > { %v2247_v8 = vadd.f32 %v2088_v13, %v1766_v27  ;;  %v2090_v42 = vpop.f32.mrb[33].mxu0  ;;  %v1789_v13 = vld [vmem:[#allocation2 + $0xb8] sm:$0xff] }
 0x30e   : > { %v2248_v49 = vadd.f32 %v2090_v42, %v1767_v34  ;;  %v2092_v0 = vpop.f32.mrb[34].mxu0 }
 0x30f   : > { %2311 = vst [vmem:[#allocation2] sm:$0xff] %v2247_v8  ;;  %v2249_v16 = vadd.f32 %v2092_v0, %v1768_v40  ;;  %v2094_v61 = vpop.f32.mrb[35].mxu0  ;;  %v1790_v0 = vld [vmem:[#allocation2 + $0xc0] sm:$0xff] }
 0x310   : > { %2312 = vst [vmem:[#allocation2 + $0x8] sm:$0xff] %v2248_v49  ;;  %v2250_v58 = vadd.f32 %v2094_v61, %v1769_v29 }
 0x311   : > { %2313 = vst [vmem:[#allocation2 + $0x10] sm:$0xff] %v2249_v16  ;;  %v1791_v16 = vld [vmem:[#allocation2 + $0xc8] sm:$0xff] }
 0x312   : > { %2314 = vst [vmem:[#allocation2 + $0x18] sm:$0xff] %v2250_v58  ;;  %v1792_v58 = vld [vmem:[#allocation2 + $0xd0] sm:$0xff] }
 0x314   : > { %v2098_v37 = vpop.f32.mrb[36].mxu0 }
 0x315   : > { %v2251_v43 = vadd.f32 %v2098_v37, %v1770_v1  ;;  %v2100_v31 = vpop.f32.mrb[37].mxu0  ;;  %v1793_v37 = vld [vmem:[#allocation2 + $0xd8] sm:$0xff] }
 0x316   : > { %v2252_v44 = vadd.f32 %v2100_v31, %v1771_v28  ;;  %v2102_v3 = vpop.f32.mrb[38].mxu0 }
 0x317   : > { %2315 = vst [vmem:[#allocation2 + $0x20] sm:$0xff] %v2251_v43  ;;  %v2253_v52 = vadd.f32 %v2102_v3, %v1772_v30  ;;  %v2104_v51 = vpop.f32.mrb[39].mxu0  ;;  %v1794_v3 = vld [vmem:[#allocation2 + $0xe0] sm:$0xff] }
 0x318   : > { %2316 = vst [vmem:[#allocation2 + $0x28] sm:$0xff] %v2252_v44  ;;  %v2254_v60 = vadd.f32 %v2104_v51, %v1773_v62 }
 0x319   : > { %2317 = vst [vmem:[#allocation2 + $0x30] sm:$0xff] %v2253_v52  ;;  %v1795_v52 = vld [vmem:[#allocation2 + $0xe8] sm:$0xff] }
 0x31a   : > { %2318 = vst [vmem:[#allocation2 + $0x38] sm:$0xff] %v2254_v60  ;;  %v1796_v60 = vld [vmem:[#allocation2 + $0xf0] sm:$0xff] }
 0x31c   : > { %v2108_v19 = vpop.f32.mrb[40].mxu0 }
 0x31d   : > { %v2255_v4 = vadd.f32 %v2108_v19, %v1774_v5  ;;  %v2110_v22 = vpop.f32.mrb[41].mxu0  ;;  %v1797_v19 = vld [vmem:[#allocation2 + $0xf8] sm:$0xff] }
 0x31e   : > { %v2256_v25 = vadd.f32 %v2110_v22, %v1775_v32  ;;  %v2112_v47 = vpop.f32.mrb[42].mxu0 }
 0x31f   : > { %2319 = vst [vmem:[#allocation2 + $0x40] sm:$0xff] %v2255_v4  ;;  %v2257_v20 = vadd.f32 %v2112_v47, %v1776_v10  ;;  %v2114_v18 = vpop.f32.mrb[43].mxu0  ;;  %v1798_v47 = vld [vmem:[#allocation2 + $0x100] sm:$0xff] }
 0x320   : > { %2320 = vst [vmem:[#allocation2 + $0x48] sm:$0xff] %v2256_v25  ;;  %v2258_v53 = vadd.f32 %v2114_v18, %v1777_v21 }
 0x321   : > { %2321 = vst [vmem:[#allocation2 + $0x50] sm:$0xff] %v2257_v20  ;;  %v1799_v20 = vld [vmem:[#allocation2 + $0x108] sm:$0xff] }
 0x322   : > { %2322 = vst [vmem:[#allocation2 + $0x58] sm:$0xff] %v2258_v53  ;;  %v1800_v53 = vld [vmem:[#allocation2 + $0x110] sm:$0xff] }
 0x324   : > { %v2118_v50 = vpop.f32.mrb[44].mxu0 }
 0x325   : > { %v2259_v46 = vadd.f32 %v2118_v50, %v1778_v55  ;;  %v2120_v63 = vpop.f32.mrb[45].mxu0  ;;  %v1801_v50 = vld [vmem:[#allocation2 + $0x118] sm:$0xff] }
 0x326   : > { %v2260_v24 = vadd.f32 %v2120_v63, %v1779_v12  ;;  %v2122_v26 = vpop.f32.mrb[46].mxu0 }
 0x327   : > { %2323 = vst [vmem:[#allocation2 + $0x60] sm:$0xff] %v2259_v46  ;;  %v2261_v59 = vadd.f32 %v2122_v26, %v1780_v39  ;;  %v2124_v15 = vpop.f32.mrb[47].mxu0  ;;  %v1802_v26 = vld [vmem:[#allocation2 + $0x120] sm:$0xff] }
 0x328   : > { %2324 = vst [vmem:[#allocation2 + $0x68] sm:$0xff] %v2260_v24  ;;  %v2262_v57 = vadd.f32 %v2124_v15, %v1781_v7 }
 0x329   : > { %2325 = vst [vmem:[#allocation2 + $0x70] sm:$0xff] %v2261_v59  ;;  %v1803_v59 = vld [vmem:[#allocation2 + $0x128] sm:$0xff] }
 0x32a   : > { %2326 = vst [vmem:[#allocation2 + $0x78] sm:$0xff] %v2262_v57  ;;  %v1804_v57 = vld [vmem:[#allocation2 + $0x130] sm:$0xff] }
 0x32c   : > { %v2128_v38 = vpop.f32.mrb[48].mxu0 }
 0x32d   : > { %v2263_v33 = vadd.f32 %v2128_v38, %v1782_v23  ;;  %v2130_v41 = vpop.f32.mrb[49].mxu0  ;;  %v1805_v38 = vld [vmem:[#allocation2 + $0x138] sm:$0xff] }
 0x32e   : > { %v2264_v36 = vadd.f32 %v2130_v41, %v1783_v35  ;;  %v2132_v45 = vpop.f32.mrb[50].mxu0 }
 0x32f   : > { %2327 = vst [vmem:[#allocation2 + $0x80] sm:$0xff] %v2263_v33  ;;  %v2265_v9 = vadd.f32 %v2132_v45, %v1784_v48  ;;  %v2134_v2 = vpop.f32.mrb[51].mxu0  ;;  %v1806_v45 = vld [vmem:[#allocation2 + $0x140] sm:$0xff] }
 0x330   : > { %2328 = vst [vmem:[#allocation2 + $0x88] sm:$0xff] %v2264_v36  ;;  %v2266_v11 = vadd.f32 %v2134_v2, %v1785_v14 }
 0x331   : > { %2329 = vst [vmem:[#allocation2 + $0x90] sm:$0xff] %v2265_v9  ;;  %v1807_v9 = vld [vmem:[#allocation2 + $0x148] sm:$0xff] }
 0x332   : > { %2330 = vst [vmem:[#allocation2 + $0x98] sm:$0xff] %v2266_v11  ;;  %v1808_v11 = vld [vmem:[#allocation2 + $0x150] sm:$0xff] }
 0x334   : > { %v2138_v56 = vpop.f32.mrb[52].mxu0 }
 0x335   : > { %v2267_v27 = vadd.f32 %v2138_v56, %v1786_v6  ;;  %v2140_v34 = vpop.f32.mrb[53].mxu0  ;;  %v1809_v56 = vld [vmem:[#allocation2 + $0x158] sm:$0xff] }
 0x336   : > { %v2268_v40 = vadd.f32 %v2140_v34, %v1787_v54  ;;  %v2142_v8 = vpop.f32.mrb[54].mxu0 }
 0x337   : > { %2331 = vst [vmem:[#allocation2 + $0xa0] sm:$0xff] %v2267_v27  ;;  %v2269_v42 = vadd.f32 %v2142_v8, %v1788_v17  ;;  %v2144_v29 = vpop.f32.mrb[55].mxu0  ;;  %v1810_v8 = vld [vmem:[#allocation2 + $0x160] sm:$0xff] }
 0x338   : > { %2332 = vst [vmem:[#allocation2 + $0xa8] sm:$0xff] %v2268_v40  ;;  %v2270_v49 = vadd.f32 %v2144_v29, %v1789_v13 }
 0x339   : > { %2333 = vst [vmem:[#allocation2 + $0xb0] sm:$0xff] %v2269_v42  ;;  %v1811_v42 = vld [vmem:[#allocation2 + $0x168] sm:$0xff] }
 0x33a   : > { %2334 = vst [vmem:[#allocation2 + $0xb8] sm:$0xff] %v2270_v49  ;;  %v1812_v49 = vld [vmem:[#allocation2 + $0x170] sm:$0xff] }
 0x33c   : > { %v2148_v61 = vpop.f32.mrb[56].mxu0 }
 0x33d   : > { %v2271_v1 = vadd.f32 %v2148_v61, %v1790_v0  ;;  %v2150_v28 = vpop.f32.mrb[57].mxu0  ;;  %v1813_v61 = vld [vmem:[#allocation2 + $0x178] sm:$0xff] }
 0x33e   : > { %v2272_v30 = vadd.f32 %v2150_v28, %v1791_v16  ;;  %v2152_v43 = vpop.f32.mrb[58].mxu0 }
 0x33f   : > { %2335 = vst [vmem:[#allocation2 + $0xc0] sm:$0xff] %v2271_v1  ;;  %v2273_v31 = vadd.f32 %v2152_v43, %v1792_v58  ;;  %v2154_v62 = vpop.f32.mrb[59].mxu0  ;;  %v1814_v43 = vld [vmem:[#allocation2 + $0x180] sm:$0xff] }
 0x340   : > { %2336 = vst [vmem:[#allocation2 + $0xc8] sm:$0xff] %v2272_v30  ;;  %v2274_v44 = vadd.f32 %v2154_v62, %v1793_v37 }
 0x341   : > { %2337 = vst [vmem:[#allocation2 + $0xd0] sm:$0xff] %v2273_v31  ;;  %v1815_v31 = vld [vmem:[#allocation2 + $0x188] sm:$0xff] }
 0x342   : > { %2338 = vst [vmem:[#allocation2 + $0xd8] sm:$0xff] %v2274_v44  ;;  %v1816_v44 = vld [vmem:[#allocation2 + $0x190] sm:$0xff] }
 0x344   : > { %v2158_v51 = vpop.f32.mrb[60].mxu0 }
 0x345   : > { %v2275_v5 = vadd.f32 %v2158_v51, %v1794_v3  ;;  %v2160_v32 = vpop.f32.mrb[61].mxu0  ;;  %v1817_v51 = vld [vmem:[#allocation2 + $0x198] sm:$0xff] }
 0x346   : > { %v2276_v10 = vadd.f32 %v2160_v32, %v1795_v52  ;;  %v2162_v4 = vpop.f32.mrb[62].mxu0 }
 0x347   : > { %2339 = vst [vmem:[#allocation2 + $0xe0] sm:$0xff] %v2275_v5  ;;  %v2277_v22 = vadd.f32 %v2162_v4, %v1796_v60  ;;  %v2164_v21 = vpop.f32.mrb[63].mxu0  ;;  %v1818_v4 = vld [vmem:[#allocation2 + $0x1a0] sm:$0xff] }
 0x348   : > { %2340 = vst [vmem:[#allocation2 + $0xe8] sm:$0xff] %v2276_v10  ;;  %v2278_v25 = vadd.f32 %v2164_v21, %v1797_v19 }
 0x349   : > { %2341 = vst [vmem:[#allocation2 + $0xf0] sm:$0xff] %v2277_v22  ;;  %v1819_v22 = vld [vmem:[#allocation2 + $0x1a8] sm:$0xff] }
 0x34a   : > { %2342 = vst [vmem:[#allocation2 + $0xf8] sm:$0xff] %v2278_v25  ;;  %v1820_v25 = vld [vmem:[#allocation2 + $0x1b0] sm:$0xff] }
 0x34c   : > { %v2168_v18 = vpop.f32.mrb[64].mxu0 }
 0x34d   : > { %v2279_v55 = vadd.f32 %v2168_v18, %v1798_v47  ;;  %v2170_v12 = vpop.f32.mrb[65].mxu0  ;;  %v1821_v18 = vld [vmem:[#allocation2 + $0x1b8] sm:$0xff] }
 0x34e   : > { %v2280_v39 = vadd.f32 %v2170_v12, %v1799_v20  ;;  %v2172_v46 = vpop.f32.mrb[66].mxu0 }
 0x34f   : > { %2343 = vst [vmem:[#allocation2 + $0x100] sm:$0xff] %v2279_v55  ;;  %v2281_v63 = vadd.f32 %v2172_v46, %v1800_v53  ;;  %v2174_v7 = vpop.f32.mrb[67].mxu0  ;;  %v1822_v46 = vld [vmem:[#allocation2 + $0x1c0] sm:$0xff] }
 0x350   : > { %2344 = vst [vmem:[#allocation2 + $0x108] sm:$0xff] %v2280_v39  ;;  %v2282_v24 = vadd.f32 %v2174_v7, %v1801_v50 }
 0x351   : > { %2345 = vst [vmem:[#allocation2 + $0x110] sm:$0xff] %v2281_v63  ;;  %v1823_v63 = vld [vmem:[#allocation2 + $0x1c8] sm:$0xff] }
 0x352   : > { %2346 = vst [vmem:[#allocation2 + $0x118] sm:$0xff] %v2282_v24  ;;  %v1824_v24 = vld [vmem:[#allocation2 + $0x1d0] sm:$0xff] }
 0x354   : > { %v2178_v15 = vpop.f32.mrb[68].mxu0 }
 0x355   : > { %v2283_v23 = vadd.f32 %v2178_v15, %v1802_v26  ;;  %v2180_v35 = vpop.f32.mrb[69].mxu0  ;;  %v1825_v15 = vld [vmem:[#allocation2 + $0x1d8] sm:$0xff] }
 0x356   : > { %v2284_v48 = vadd.f32 %v2180_v35, %v1803_v59  ;;  %v2182_v33 = vpop.f32.mrb[70].mxu0 }
 0x357   : > { %2347 = vst [vmem:[#allocation2 + $0x120] sm:$0xff] %v2283_v23  ;;  %v2285_v41 = vadd.f32 %v2182_v33, %v1804_v57  ;;  %v2184_v14 = vpop.f32.mrb[71].mxu0  ;;  %v1826_v33 = vld [vmem:[#allocation2 + $0x1e0] sm:$0xff] }
 0x358   : > { %2348 = vst [vmem:[#allocation2 + $0x128] sm:$0xff] %v2284_v48  ;;  %v2286_v36 = vadd.f32 %v2184_v14, %v1805_v38 }
 0x359   : > { %2349 = vst [vmem:[#allocation2 + $0x130] sm:$0xff] %v2285_v41  ;;  %v1827_v41 = vld [vmem:[#allocation2 + $0x1e8] sm:$0xff] }
 0x35a   : > { %2350 = vst [vmem:[#allocation2 + $0x138] sm:$0xff] %v2286_v36  ;;  %v1828_v36 = vld [vmem:[#allocation2 + $0x1f0] sm:$0xff] }
 0x35c   : > { %v2188_v2 = vpop.f32.mrb[72].mxu0 }
 0x35d   : > { %v2287_v6 = vadd.f32 %v2188_v2, %v1806_v45  ;;  %v2190_v54 = vpop.f32.mrb[73].mxu0  ;;  %v1829_v2 = vld [vmem:[#allocation2 + $0x1f8] sm:$0xff] }
 0x35e   : > { %v2288_v17 = vadd.f32 %v2190_v54, %v1807_v9  ;;  %v2192_v27 = vpop.f32.mrb[74].mxu0 }
 0x35f   : > { %2351 = vst [vmem:[#allocation2 + $0x140] sm:$0xff] %v2287_v6  ;;  %v2289_v34 = vadd.f32 %v2192_v27, %v1808_v11  ;;  %v2194_v13 = vpop.f32.mrb[75].mxu0  ;;  %v2379_v27 = vld [vmem:[#allocation2] sm:$0xff] (!%p2985_p5) }
 0x360   : > { %2352 = vst [vmem:[#allocation2 + $0x148] sm:$0xff] %v2288_v17  ;;  %v2290_v40 = vadd.f32 %v2194_v13, %v1809_v56  ;;  %v2381_v13 = vld [vmem:[#allocation2 + $0x10] sm:$0xff] (!%p2985_p5) }
 0x361   : > { %2353 = vst [vmem:[#allocation2 + $0x150] sm:$0xff] %v2289_v34  ;;  %v2380_v34 = vld [vmem:[#allocation2 + $0x8] sm:$0xff] (!%p2985_p5) }
 0x362   : > { %2354 = vst [vmem:[#allocation2 + $0x158] sm:$0xff] %v2290_v40  ;;  %v3030_v40 = vpack.c.bf16 (!%p2985_p5), %v2380_v34, %v2379_v27 }
 0x364   : > { %v2198_v29 = vpop.f32.mrb[76].mxu0  ;;  %2635 = vst [vmem:[%s4169_s30] sm:$0xff] (!%p2985_p5), %v3030_v40 }
 0x365   : > { %v2291_v0 = vadd.f32 %v2198_v29, %v1810_v8  ;;  %v2200_v16 = vpop.f32.mrb[77].mxu0  ;;  %v2382_v8 = vld [vmem:[#allocation2 + $0x18] sm:$0xff] (!%p2985_p5)  ;;  %v2384_v29 = vld [vmem:[#allocation2 + $0x28] sm:$0xff] (!%p2985_p5) }
 0x366   : > { %v2292_v58 = vadd.f32 %v2200_v16, %v1811_v42  ;;  %v2202_v1 = vpop.f32.mrb[78].mxu0  ;;  %v2383_v42 = vld [vmem:[#allocation2 + $0x20] sm:$0xff] (!%p2985_p5)  ;;  %v2385_v16 = vld [vmem:[#allocation2 + $0x30] sm:$0xff] (!%p2985_p5) }
 0x367   : > { %2355 = vst [vmem:[#allocation2 + $0x160] sm:$0xff] %v2291_v0  ;;  %v2293_v28 = vadd.f32 %v2202_v1, %v1812_v49  ;;  %v2204_v37 = vpop.f32.mrb[79].mxu0  ;;  %v3031_v49 = vpack.c.bf16 (!%p2985_p5), %v2382_v8, %v2381_v13  ;;  %v3032_v0 = vpack.c.bf16 (!%p2985_p5), %v2384_v29, %v2383_v42 }
 0x368   : > { %2356 = vst [vmem:[#allocation2 + $0x168] sm:$0xff] %v2292_v58  ;;  %v2294_v30 = vadd.f32 %v2204_v37, %v1813_v61  ;;  %v2386_v61 = vld [vmem:[#allocation2 + $0x38] sm:$0xff] (!%p2985_p5)  ;;  %v2387_v58 = vld [vmem:[#allocation2 + $0x40] sm:$0xff] (!%p2985_p5)  ;;  %v2389_v37 = vld [vmem:[#allocation2 + $0x50] sm:$0xff] (!%p2985_p5) }
 0x369   : > { %2357 = vst [vmem:[#allocation2 + $0x170] sm:$0xff] %v2293_v28  ;;  %v3033_v1 = vpack.c.bf16 (!%p2985_p5), %v2386_v61, %v2385_v16  ;;  %v2388_v28 = vld [vmem:[#allocation2 + $0x48] sm:$0xff] (!%p2985_p5)  ;;  %2636 = vst [vmem:[%s4169_s30 + $0x8] sm:$0xff] (!%p2985_p5), %v3031_v49  ;;  %v2422_v27 = vld [vmem:[#allocation2 + $0x158] sm:$0xff] (!%p2985_p5) }
 0x36a   : > { %2358 = vst [vmem:[#allocation2 + $0x178] sm:$0xff] %v2294_v30  ;;  %v2390_v30 = vld [vmem:[#allocation2 + $0x58] sm:$0xff] (!%p2985_p5)  ;;  %2637 = vst [vmem:[%s4169_s30 + $0x10] sm:$0xff] (!%p2985_p5), %v3032_v0 }
 0x36b   : > { %2638 = vst [vmem:[%s4169_s30 + $0x18] sm:$0xff] (!%p2985_p5), %v3033_v1 }
 0x36c   : > { %v2208_v62 = vpop.f32.mrb[80].mxu0 }
 0x36d   : > { %v2295_v3 = vadd.f32 %v2208_v62, %v1814_v43  ;;  %v2210_v52 = vpop.f32.mrb[81].mxu0  ;;  %v3034_v43 = vpack.c.bf16 (!%p2985_p5), %v2388_v28, %v2387_v58  ;;  %v2391_v62 = vld [vmem:[#allocation2 + $0x60] sm:$0xff] (!%p2985_p5) }
 0x36e   : > { %v2296_v60 = vadd.f32 %v2210_v52, %v1815_v31  ;;  %v2212_v5 = vpop.f32.mrb[82].mxu0  ;;  %v3035_v31 = vpack.c.bf16 (!%p2985_p5), %v2390_v30, %v2389_v37  ;;  %v2423_v34 = vld [vmem:[#allocation2 + $0x160] sm:$0xff] (!%p2985_p5) }
 0x36f   : > { %2359 = vst [vmem:[#allocation2 + $0x180] sm:$0xff] %v2295_v3  ;;  %v2297_v32 = vadd.f32 %v2212_v5, %v1816_v44  ;;  %v2214_v19 = vpop.f32.mrb[83].mxu0  ;;  %v2392_v44 = vld [vmem:[#allocation2 + $0x68] sm:$0xff] (!%p2985_p5)  ;;  %v2393_v3 = vld [vmem:[#allocation2 + $0x70] sm:$0xff] (!%p2985_p5)  ;;  %2639 = vst [vmem:[%s4169_s30 + $0x20] sm:$0xff] (!%p2985_p5), %v3034_v43 }
 0x370   : > { %2360 = vst [vmem:[#allocation2 + $0x188] sm:$0xff] %v2296_v60  ;;  %v2298_v10 = vadd.f32 %v2214_v19, %v1817_v51  ;;  %v3036_v52 = vpack.c.bf16 (!%p2985_p5), %v2392_v44, %v2391_v62  ;;  %v2394_v51 = vld [vmem:[#allocation2 + $0x78] sm:$0xff] (!%p2985_p5)  ;;  %v2395_v60 = vld [vmem:[#allocation2 + $0x80] sm:$0xff] (!%p2985_p5)  ;;  %v2396_v5 = vld [vmem:[#allocation2 + $0x88] sm:$0xff] (!%p2985_p5) }
 0x371   : > { %2361 = vst [vmem:[#allocation2 + $0x190] sm:$0xff] %v2297_v32  ;;  %2640 = vst [vmem:[%s4169_s30 + $0x28] sm:$0xff] (!%p2985_p5), %v3035_v31  ;;  %v3037_v32 = vpack.c.bf16 (!%p2985_p5), %v2394_v51, %v2393_v3  ;;  %v3038_v19 = vpack.c.bf16 (!%p2985_p5), %v2396_v5, %v2395_v60  ;;  %v2424_v40 = vld [vmem:[#allocation2 + $0x168] sm:$0xff] (!%p2985_p5)  ;;  %v2425_v8 = vld [vmem:[#allocation2 + $0x170] sm:$0xff] (!%p2985_p5) }
 0x372   : > { %2362 = vst [vmem:[#allocation2 + $0x198] sm:$0xff] %v2298_v10  ;;  %v2397_v10 = vld [vmem:[#allocation2 + $0x90] sm:$0xff] (!%p2985_p5)  ;;  %2641 = vst [vmem:[%s4169_s30 + $0x30] sm:$0xff] (!%p2985_p5), %v3036_v52  ;;  %v2426_v42 = vld [vmem:[#allocation2 + $0x178] sm:$0xff] (!%p2985_p5)  ;;  %v3052_v29 = vpack.c.bf16 (!%p2985_p5), %v2424_v40, %v2423_v34 }
 0x373   : > { %2642 = vst [vmem:[%s4169_s30 + $0x38] sm:$0xff] (!%p2985_p5), %v3037_v32  ;;  %2643 = vst [vmem:[%s4169_s30 + $0x40] sm:$0xff] (!%p2985_p5), %v3038_v19  ;;  %v3053_v49 = vpack.c.bf16 (!%p2985_p5), %v2426_v42, %v2425_v8 }
 0x374   : > { %v2218_v21 = vpop.f32.mrb[84].mxu0  ;;  %2657 = vst [vmem:[%s4169_s30 + $0xb0] sm:$0xff] (!%p2985_p5), %v3052_v29 }
 0x375   : > { %v2299_v47 = vadd.f32 %v2218_v21, %v1818_v4  ;;  %v2220_v20 = vpop.f32.mrb[85].mxu0  ;;  %v2398_v4 = vld [vmem:[#allocation2 + $0x98] sm:$0xff] (!%p2985_p5)  ;;  %2658 = vst [vmem:[%s4169_s30 + $0xb8] sm:$0xff] (!%p2985_p5), %v3053_v49 }
 0x376   : > { %v2300_v53 = vadd.f32 %v2220_v20, %v1819_v22  ;;  %v2222_v55 = vpop.f32.mrb[86].mxu0  ;;  %v2399_v22 = vld [vmem:[#allocation2 + $0xa0] sm:$0xff] (!%p2985_p5)  ;;  %v3039_v21 = vpack.c.bf16 (!%p2985_p5), %v2398_v4, %v2397_v10  ;;  %v2402_v20 = vld [vmem:[#allocation2 + $0xb8] sm:$0xff] (!%p2985_p5) }
 0x377   : > { %2363 = vst [vmem:[#allocation2 + $0x1a0] sm:$0xff] %v2299_v47  ;;  %v2301_v12 = vadd.f32 %v2222_v55, %v1820_v25  ;;  %v2224_v50 = vpop.f32.mrb[87].mxu0  ;;  %v2400_v25 = vld [vmem:[#allocation2 + $0xa8] sm:$0xff] (!%p2985_p5)  ;;  %v2401_v47 = vld [vmem:[#allocation2 + $0xb0] sm:$0xff] (!%p2985_p5)  ;;  %v2403_v55 = vld [vmem:[#allocation2 + $0xc0] sm:$0xff] (!%p2985_p5) }
 0x378   : > { %2364 = vst [vmem:[#allocation2 + $0x1a8] sm:$0xff] %v2300_v53  ;;  %v2302_v39 = vadd.f32 %v2224_v50, %v1821_v18  ;;  %v3040_v18 = vpack.c.bf16 (!%p2985_p5), %v2400_v25, %v2399_v22  ;;  %v3041_v53 = vpack.c.bf16 (!%p2985_p5), %v2402_v20, %v2401_v47  ;;  %v2405_v50 = vld [vmem:[#allocation2 + $0xd0] sm:$0xff] (!%p2985_p5)  ;;  %2644 = vst [vmem:[%s4169_s30 + $0x48] sm:$0xff] (!%p2985_p5), %v3039_v21  ;;  %v2427_v0 = vld [vmem:[#allocation2 + $0x180] sm:$0xff] (!%p2985_p5) }
 0x379   : > { %2365 = vst [vmem:[#allocation2 + $0x1b0] sm:$0xff] %v2301_v12  ;;  %v2404_v12 = vld [vmem:[#allocation2 + $0xc8] sm:$0xff] (!%p2985_p5)  ;;  %v2429_v61 = vld [vmem:[#allocation2 + $0x190] sm:$0xff] (!%p2985_p5)  ;;  %v2430_v1 = vld [vmem:[#allocation2 + $0x198] sm:$0xff] (!%p2985_p5) }
 0x37a   : > { %2366 = vst [vmem:[#allocation2 + $0x1b8] sm:$0xff] %v2302_v39  ;;  %v3042_v39 = vpack.c.bf16 (!%p2985_p5), %v2404_v12, %v2403_v55  ;;  %2645 = vst [vmem:[%s4169_s30 + $0x50] sm:$0xff] (!%p2985_p5), %v3040_v18  ;;  %v2428_v16 = vld [vmem:[#allocation2 + $0x188] sm:$0xff] (!%p2985_p5)  ;;  %v3055_v30 = vpack.c.bf16 (!%p2985_p5), %v2430_v1, %v2429_v61 }
 0x37b   : > { %2646 = vst [vmem:[%s4169_s30 + $0x58] sm:$0xff] (!%p2985_p5), %v3041_v53  ;;  %v3054_v58 = vpack.c.bf16 (!%p2985_p5), %v2428_v16, %v2427_v0 }
 0x37c   : > { %v2228_v7 = vpop.f32.mrb[88].mxu0  ;;  %2647 = vst [vmem:[%s4169_s30 + $0x60] sm:$0xff] (!%p2985_p5), %v3042_v39  ;;  %2660 = vst [vmem:[%s4169_s30 + $0xc8] sm:$0xff] (!%p2985_p5), %v3055_v30 }
 0x37d   : > { %v2303_v26 = vadd.f32 %v2228_v7, %v1822_v46  ;;  %v2230_v59 = vpop.f32.mrb[89].mxu0  ;;  %v2406_v46 = vld [vmem:[#allocation2 + $0xd8] sm:$0xff] (!%p2985_p5)  ;;  %v2408_v7 = vld [vmem:[#allocation2 + $0xe8] sm:$0xff] (!%p2985_p5)  ;;  %2659 = vst [vmem:[%s4169_s30 + $0xc0] sm:$0xff] (!%p2985_p5), %v3054_v58 }
 0x37e   : > { %v2304_v57 = vadd.f32 %v2230_v59, %v1823_v63  ;;  %v2232_v23 = vpop.f32.mrb[90].mxu0  ;;  %v2407_v63 = vld [vmem:[#allocation2 + $0xe0] sm:$0xff] (!%p2985_p5)  ;;  %v2409_v59 = vld [vmem:[#allocation2 + $0xf0] sm:$0xff] (!%p2985_p5) }
 0x37f   : > { %2367 = vst [vmem:[#allocation2 + $0x1c0] sm:$0xff] %v2303_v26  ;;  %v2305_v35 = vadd.f32 %v2232_v23, %v1824_v24  ;;  %v2234_v38 = vpop.f32.mrb[91].mxu0  ;;  %v3043_v24 = vpack.c.bf16 (!%p2985_p5), %v2406_v46, %v2405_v50  ;;  %v3044_v26 = vpack.c.bf16 (!%p2985_p5), %v2408_v7, %v2407_v63  ;;  %v2431_v28 = vld [vmem:[#allocation2 + $0x1a0] sm:$0xff] (!%p2985_p5)  ;;  %v2432_v37 = vld [vmem:[#allocation2 + $0x1a8] sm:$0xff] (!%p2985_p5) }
 0x380   : > { %2368 = vst [vmem:[#allocation2 + $0x1c8] sm:$0xff] %v2304_v57  ;;  %v2306_v48 = vadd.f32 %v2234_v38, %v1825_v15  ;;  %v2410_v15 = vld [vmem:[#allocation2 + $0xf8] sm:$0xff] (!%p2985_p5)  ;;  %v2411_v57 = vld [vmem:[#allocation2 + $0x100] sm:$0xff] (!%p2985_p5)  ;;  %v2413_v38 = vld [vmem:[#allocation2 + $0x110] sm:$0xff] (!%p2985_p5)  ;;  %v3056_v43 = vpack.c.bf16 (!%p2985_p5), %v2432_v37, %v2431_v28 }
 0x381   : > { %2369 = vst [vmem:[#allocation2 + $0x1d0] sm:$0xff] %v2305_v35  ;;  %v3045_v23 = vpack.c.bf16 (!%p2985_p5), %v2410_v15, %v2409_v59  ;;  %v2412_v35 = vld [vmem:[#allocation2 + $0x108] sm:$0xff] (!%p2985_p5)  ;;  %2648 = vst [vmem:[%s4169_s30 + $0x68] sm:$0xff] (!%p2985_p5), %v3043_v24  ;;  %v2433_v31 = vld [vmem:[#allocation2 + $0x1b0] sm:$0xff] (!%p2985_p5) }
 0x382   : > { %2370 = vst [vmem:[#allocation2 + $0x1d8] sm:$0xff] %v2306_v48  ;;  %v2414_v48 = vld [vmem:[#allocation2 + $0x118] sm:$0xff] (!%p2985_p5)  ;;  %2649 = vst [vmem:[%s4169_s30 + $0x70] sm:$0xff] (!%p2985_p5), %v3044_v26 }
 0x383   : > { %2650 = vst [vmem:[%s4169_s30 + $0x78] sm:$0xff] (!%p2985_p5), %v3045_v23  ;;  %v2434_v62 = vld [vmem:[#allocation2 + $0x1b8] sm:$0xff] (!%p2985_p5)  ;;  %2661 = vst [vmem:[%s4169_s30 + $0xd0] sm:$0xff] (!%p2985_p5), %v3056_v43 }
 0x384   : > { %v2238_v14 = vpop.f32.mrb[92].mxu0  ;;  %2378 = sbr.rel (%p2985_p5) target bundleno = 917 (0x395), region = 60  ;;  %v3057_v3 = vpack.c.bf16 (!%p2985_p5), %v2434_v62, %v2433_v31 }
 0x385   : > { %v2307_v45 = vadd.f32 %v2238_v14, %v1826_v33  ;;  %v2240_v9 = vpop.f32.mrb[93].mxu0  ;;  %v3046_v33 = vpack.c.bf16 (!%p2985_p5), %v2412_v35, %v2411_v57  ;;  %v2415_v14 = vld [vmem:[#allocation2 + $0x120] sm:$0xff] (!%p2985_p5) }
 0x386   : > { %v2308_v11 = vadd.f32 %v2240_v9, %v1827_v41  ;;  %v2242_v6 = vpop.f32.mrb[94].mxu0  ;;  %v3047_v41 = vpack.c.bf16 (!%p2985_p5), %v2414_v48, %v2413_v38  ;;  %v2435_v44 = vld [vmem:[#allocation2 + $0x1c0] sm:$0xff] (!%p2985_p5)  ;;  %2662 = vst [vmem:[%s4169_s30 + $0xd8] sm:$0xff] (!%p2985_p5), %v3057_v3 }
 0x387   : > { %2371 = vst [vmem:[#allocation2 + $0x1e0] sm:$0xff] %v2307_v45  ;;  %v2309_v54 = vadd.f32 %v2242_v6, %v1828_v36  ;;  %v2244_v56 = vpop.f32.mrb[95].mxu0  ;;  %v2416_v36 = vld [vmem:[#allocation2 + $0x128] sm:$0xff] (!%p2985_p5)  ;;  %v2417_v45 = vld [vmem:[#allocation2 + $0x130] sm:$0xff] (!%p2985_p5)  ;;  %2651 = vst [vmem:[%s4169_s30 + $0x80] sm:$0xff] (!%p2985_p5), %v3046_v33 }
 0x388   : > { %2372 = vst [vmem:[#allocation2 + $0x1e8] sm:$0xff] %v2308_v11  ;;  %v2310_v17 = vadd.f32 %v2244_v56, %v1829_v2  ;;  %v3048_v9 = vpack.c.bf16 (!%p2985_p5), %v2416_v36, %v2415_v14  ;;  %v2418_v2 = vld [vmem:[#allocation2 + $0x138] sm:$0xff] (!%p2985_p5)  ;;  %v2419_v11 = vld [vmem:[#allocation2 + $0x140] sm:$0xff] (!%p2985_p5)  ;;  %v2420_v6 = vld [vmem:[#allocation2 + $0x148] sm:$0xff] (!%p2985_p5) }
 0x389   : > { %2373 = vst [vmem:[#allocation2 + $0x1f0] sm:$0xff] %v2309_v54  ;;  %2652 = vst [vmem:[%s4169_s30 + $0x88] sm:$0xff] (!%p2985_p5), %v3047_v41  ;;  %v3049_v54 = vpack.c.bf16 (!%p2985_p5), %v2418_v2, %v2417_v45  ;;  %v3050_v56 = vpack.c.bf16 (!%p2985_p5), %v2420_v6, %v2419_v11  ;;  %v2436_v52 = vld [vmem:[#allocation2 + $0x1c8] sm:$0xff] (!%p2985_p5)  ;;  %v2437_v51 = vld [vmem:[#allocation2 + $0x1d0] sm:$0xff] (!%p2985_p5) }
 0x38a   : > { %2374 = vst [vmem:[#allocation2 + $0x1f8] sm:$0xff] %v2310_v17  ;;  %v2421_v17 = vld [vmem:[#allocation2 + $0x150] sm:$0xff] (!%p2985_p5)  ;;  %2653 = vst [vmem:[%s4169_s30 + $0x90] sm:$0xff] (!%p2985_p5), %v3048_v9  ;;  %v2438_v60 = vld [vmem:[#allocation2 + $0x1d8] sm:$0xff] (!%p2985_p5)  ;;  %v3058_v5 = vpack.c.bf16 (!%p2985_p5), %v2436_v52, %v2435_v44 }
 0x38b   : > { %v3051_v13 = vpack.c.bf16 %v2422_v27, %v2421_v17  ;;  %2654 = vst [vmem:[%s4169_s30 + $0x98] sm:$0xff] %v3049_v54  ;;  %2655 = vst [vmem:[%s4169_s30 + $0xa0] sm:$0xff] %v3050_v56  ;;  %v3059_v32 = vpack.c.bf16 %v2438_v60, %v2437_v51 }
 0x38c   : > { %2663 = vst [vmem:[%s4169_s30 + $0xe0] sm:$0xff] %v3058_v5 }
 0x38d   : > { %2656 = vst [vmem:[%s4169_s30 + $0xa8] sm:$0xff] %v3051_v13  ;;  %2664 = vst [vmem:[%s4169_s30 + $0xe8] sm:$0xff] %v3059_v32 }
 0x38e   : > { %v2439_v19 = vld [vmem:[#allocation2 + $0x1e0] sm:$0xff] }
 0x38f   : > { %v2440_v10 = vld [vmem:[#allocation2 + $0x1e8] sm:$0xff] }
 0x390   : > { %v2441_v4 = vld [vmem:[#allocation2 + $0x1f0] sm:$0xff]  ;;  %v3060_v22 = vpack.c.bf16 %v2440_v10, %v2439_v19 }
 0x391   : > { %v2442_v21 = vld [vmem:[#allocation2 + $0x1f8] sm:$0xff] }
 0x392   : > { %v3061_v25 = vpack.c.bf16 %v2442_v21, %v2441_v4  ;;  %2665 = vst [vmem:[%s4169_s30 + $0xf0] sm:$0xff] %v3060_v22 }
 0x394   : > { %2666 = vst [vmem:[%s4169_s30 + $0xf8] sm:$0xff] %v3061_v25 }
 0x395 PF: > { %s4980_s7 = sld [smem:[#allocation19_spill]]  ;;  %s4981_s26 = sld [smem:[#allocation52_spill]] }
 0x396   : > { %s2682_s9 = sshll.u32 %s4169_s30, 4  ;;  %s2668_s14 = scalar_lea.sflag [#allocation5], %s4143_s12  ;;  %s4776_s9 = int_to_ptr.vmem [resolvable:$true] %s2682_s9 }
 0x397   : > { %s3659_s20 = scalar_lea.vmem %s4776_s9, 4096  ;;  %p4982_p3 = scmp.ne.s32.totalorder %s4913_s6, 0 }
 0x398   : > { %p3660_p6 = scmp.ne.s32.totalorder %s4776_s9, %s3659_s20  ;;  %s3799_s8 = smov [#allocation11]  }
 0x399   : > { %s3663_s29 = sshll.u32 %s3799_s8, 4  ;;  %s3664_s29 = int_to_ptr.vmem [resolvable:$false] %s3663_s29 }
 0x39a   : > { %p3661_p7 = pnand %p3660_p6, %p4982_p3  ;;  %s3665_s28 = scalar_lea.vmem %s3664_s29, 8192 }
 0x39b   : > { %s3063_s4 = sshll.u32 %s4980_s7, 12  ;;  %p3666_p2 = scmp.lt.s32.totalorder %s4776_s9, %s3664_s29 }
 0x39c   : > { %s4773_s1 = scalar_lea.hbm %s4981_s26, %s3063_s4  ;;  %p3662_p12 = pneg %p3661_p7 }
 0x39d   : > { %p3667_p13 = scmp.lt.s32.totalorder %s3665_s28, %s3659_s20 }
 0x39f   : > { %p3668_p8 = por %p3667_p13, %p3666_p2 }
 0x3a1   : > { %p3669_p4 = pnand %p3668_p8, %p3662_p12 }
 0x3a3   : > { %3672 = shalt.err (!%p3669_p4)
}
 0x3a4   : > { %s3673_s5 = scalar_lea.hbm %s4773_s1, 4096  ;;  %s3677_s16 = scalar_lea.hbm %s4981_s26, 8192 }
 0x3a5   : > { %p3674_p10 = scmp.ne.s32.totalorder %s4773_s1, %s3673_s5  ;;  %p3678_p0 = scmp.lt.u32.totalorder %s4773_s1, %s4981_s26 }
 0x3a6   : > { %p3679_p1 = scmp.lt.u32.totalorder %s3677_s16, %s3673_s5  ;;  %p3681_p6 = scmp.lt.u32.totalorder %s3673_s5, %s4773_s1 }
 0x3a7   : > { %p3675_p9 = pnand %p3674_p10, %p4982_p3 }
 0x3a8   : > { %p3680_p5 = por %p3679_p1, %p3678_p0 }
 0x3a9   : > { %p3676_p11 = pneg %p3675_p9 }
 0x3aa   : > { %p3682_p7 = por %p3681_p6, %p3680_p5 }
 0x3ac   : > { %p3683_p12 = pnand %p3682_p7, %p3676_p11 }
 0x3ae   : > { %3686 = shalt.err (!%p3683_p12)
}
 0x3af   : > { %s3800_s15 = smov 128   ;;  %s3801_s11 = smov 8  }
 0x3b0   : > { %3104 = dma.vmem_to_hbm [thread:$0]  (%p4982_p3), %s4776_s9, 4096, %s4773_s1, %s2668_s14, %s3800_s15, %s3800_s15, %s3801_s11  }
 0x3b1 PF: > { %p3124_p2 = scmp.ge.s32.totalorder %s3789_s25, 2  ;;  %s2697_s7 = sand.u32 1, %s3761_s18  }
 0x3b2   : > { %p4983_p13 = scmp.ne.s32.totalorder %s4915_s22, 0  ;;  %s2698_s4 = scalar_lea.sflag [#allocation5], %s2697_s7 }
 0x3b4   : > { %p3120_p8 = pnand %p3124_p2, %p4983_p13 }
 0x3b6   : > { %3744 = dma.done.wait (!%p3120_p8), %s2698_s4, 4096  }
 0x3b7   : > { %3746 = vsyncadd (!%p3120_p8), %s2698_s4, 4294963200  ;;  %s26_s25 = sadd.s32 1, %s3789_s25   ;;  %s4984_s15 = sld [smem:[#allocation16_spill]] }
 0x3b8   : > { %p23_p4 = scmp.ge.s32.totalorder %s26_s25, 6   ;;  %s4985_s24 = sld [smem:[#allocation22_spill]] }
 0x3b9   : > { %s4986_s6 = sld [smem:[#allocation17_spill]]  ;;  %s4987_s20 = sld [smem:[#allocation25_spill]] }
 0x3ba   : > { %s4988_s22 = sld [smem:[#allocation20_spill]]  ;;  %s4989_s12 = sld [smem:[#allocation21_spill]] }
 0x3bb   : > { %s4990_s13 = sld [smem:[#allocation23_spill]]  ;;  %s4991_s16 = smov %s3757_s17 }
 0x3bc   : > { %s4993_s18 = smov %s3765_s19  ;;  %s4995_s21 = smov %s3781_s23 }
 0x3bd   :  { %25 = sbr.rel (!%p23_p4) target bundleno = 16 (0x10), region = 126 }
 0x3be   : > { %s4992_s17 = smov %s4985_s24 }
 0x3bf   : > { %s4994_s19 = smov %s4986_s6 }
 0x3c0   : > { %s4996_s23 = smov %s4989_s12 }
 0x3c1   : > { %s4997_s24 = smov %s4990_s13 }
 0x3c4   :  { %2703 = vsyncpa [#allocation4], 1 }
 0x3c5   :  { %2705 = vsyncpa [#allocation4 + $0x1], 1 }
 0x3c6   :  { %2706 = vsyncpa [#allocation7], 1 }
 0x3c7   :  { %2708 = vsyncpa [#allocation7 + $0x1], 1 }
 0x3c8   :  { %2709 = vsyncpa [#allocation10], 1 }
 0x3c9   :  { %2711 = vsyncpa [#allocation10 + $0x1], 1 }
 0x3ca   :  { %2712 = vsyncpa [#allocation5], 1 }
 0x3cb   :  { %2714 = vsyncpa [#allocation5 + $0x1], 1 }

</bundles_post_ra>
